<compile_context>
chip_gen: v7x
topology: tpu7x:2x2x1
jax: 0.10.0
libtpu: 0.0.40
codegen_flags: <defaults>
</compile_context>

<pallas_src>
import jax
import jax.numpy as jnp
from jax import lax
from jax.experimental import pallas as pl
from jax.experimental.pallas import tpu as pltpu

N_EMBD = 64
N_HEAD = 8
HEAD_DIM = N_EMBD // N_HEAD
LN_EPS = 1e-5


def _layernorm(h, gamma, beta):
    mu = jnp.mean(h, axis=-1, keepdims=True)
    var = jnp.mean(jnp.square(h - mu), axis=-1, keepdims=True)
    return (h - mu) * lax.rsqrt(var + LN_EPS) * gamma + beta


def _make_block_kernel(b_tile, seq_len):
    T, C, H, D = seq_len, N_EMBD, N_HEAD, HEAD_DIM

    def kernel(x_ref, wqkv_ref, wproj_ref, bproj_ref,
               g1_ref, b1_ref, g2_ref, b2_ref,
               wf1_ref, bf1_ref, wf2_ref, bf2_ref,
               o_ref, ocat_ref):
        # x_ref holds b_tile batch elements flattened into a (b_tile*T, C) row slab.
        x = x_ref[...]

        # ---------------- self-attention branch ----------------
        h1 = _layernorm(x, g1_ref[...], b1_ref[...])
        # One fused (R, C) @ (C, 3C) matmul gives q/k/v for every head & batch element.
        qkv = jnp.dot(h1, wqkv_ref[...], preferred_element_type=jnp.float32)
        # The reference scales scores by n_embd**-0.5 (not head_size**-0.5); fold into q.
        q = qkv[:, 0:C] * jnp.float32(C ** -0.5)
        v = qkv[:, 2 * C:3 * C]
        # Hoist the K transpose out of the head loop: one (R, C) -> (C, R) transpose;
        # each per-head K block is then a free sublane slice (offsets multiple of 8).
        kT = qkv[:, C:2 * C].T

        # Causal mask shared by every head and batch element. Large finite negative so
        # exp() underflows to exactly 0 (no NaN risk even for heavily masked rows).
        rows = lax.broadcasted_iota(jnp.int32, (T, T), 0)
        cols = lax.broadcasted_iota(jnp.int32, (T, T), 1)
        causal = cols <= rows
        neg_big = jnp.float32(-1e30)

        # Per-(batch, head) attention on tiny (T, T) tiles, unrolled at trace time.
        # TODO(synk): for large b_tile switch to lax.fori_loop over VMEM-ref slices.
        for i in range(b_tile):
            r0 = i * T
            q_i = q[r0:r0 + T, :]
            v_i = v[r0:r0 + T, :]
            for h in range(H):
                c0 = h * D
                s = jnp.dot(q_i[:, c0:c0 + D], kT[c0:c0 + D, r0:r0 + T],
                            preferred_element_type=jnp.float32)        # (T, T)
                s = jnp.where(causal, s, neg_big)
                e = jnp.exp(s - jnp.max(s, axis=-1, keepdims=True))
                p = e / jnp.sum(e, axis=-1, keepdims=True)
                # TODO(synk): Dropout(0.2) on attention weights is identity (eval mode).
                o_h = jnp.dot(p, v_i[:, c0:c0 + D],
                              preferred_element_type=jnp.float32)      # (T, D)
                # head-concat == static lane-offset store into the VMEM scratch slab
                ocat_ref[r0:r0 + T, c0:c0 + D] = o_h

        # Single fused output projection over the whole slab (instead of H*b_tile dots).
        sa = jnp.dot(ocat_ref[...], wproj_ref[...], preferred_element_type=jnp.float32)
        # TODO(synk): Dropout(0.2) after the output projection is identity (eval mode).
        x1 = x + sa + bproj_ref[...]                                    # residual 1

        # ---------------- feed-forward branch ----------------
        h2 = _layernorm(x1, g2_ref[...], b2_ref[...])
        f1 = jnp.dot(h2, wf1_ref[...], preferred_element_type=jnp.float32) + bf1_ref[...]
        f1 = jnp.maximum(f1, 0.0)
        f2 = jnp.dot(f1, wf2_ref[...], preferred_element_type=jnp.float32) + bf2_ref[...]
        # TODO(synk): Dropout(0.2) at the end of FeedForward is identity (eval mode).
        o_ref[...] = (x1 + f2).astype(o_ref.dtype)                      # residual 2

    return kernel


def block_forward(x, w_qkv, w_proj, b_proj, g1, b1, g2, b2, w_f1, b_f1, w_f2, b_f2,
                  *, b_tile=None, vmem_limit_bytes=None):
    """Transformer Block forward. x: (B, T, C) -> (B, T, C)."""
    B, T, C = x.shape
    assert C == N_EMBD

    if b_tile is None:
        # Default: whole batch in one grid step (amortizes the ~0.35us/step pipeline
        # overhead and keeps every matmul M-dimension at B*T rows).  Cap the slab at
        # ~1024 rows so the f32 intermediates (qkv: rows x 192, ffn: rows x 256) stay
        # comfortably within VMEM.  On v7x pass b_tile=B//2 so the 2-wide "parallel"
        # grid puts half the batch on each TensorCore.
        b_tile = B
        while b_tile > 1 and (b_tile * T > 1024 or B % b_tile):
            b_tile -= 1
    if B % b_tile:
        b_tile = B
    if b_tile != B and (b_tile * T) % 8:
        b_tile = B                      # keep sub-batch row blocks sublane(8)-aligned
    n_chunks = B // b_tile
    rows = b_tile * T

    x2d = x.reshape(B * T, C)           # flatten rows; last dim unchanged (free reshape)
    const = lambda g: (0, 0)            # weights: constant block index -> DMA'd once

    out2d = pl.pallas_call(
        _make_block_kernel(b_tile, T),
        out_shape=jax.ShapeDtypeStruct((B * T, C), x.dtype),
        grid_spec=pltpu.PrefetchScalarGridSpec(
            num_scalar_prefetch=0,
            grid=(n_chunks,),
            in_specs=[
                pl.BlockSpec((rows, C), lambda g: (g, 0)),
                pl.BlockSpec(w_qkv.shape, const),
                pl.BlockSpec(w_proj.shape, const),
                pl.BlockSpec(b_proj.shape, const),
                pl.BlockSpec(g1.shape, const),
                pl.BlockSpec(b1.shape, const),
                pl.BlockSpec(g2.shape, const),
                pl.BlockSpec(b2.shape, const),
                pl.BlockSpec(w_f1.shape, const),
                pl.BlockSpec(b_f1.shape, const),
                pl.BlockSpec(w_f2.shape, const),
                pl.BlockSpec(b_f2.shape, const),
            ],
            out_specs=pl.BlockSpec((rows, C), lambda g: (g, 0)),
            scratch_shapes=[pltpu.VMEM((rows, C), jnp.float32)],   # head-concat slab
        ),
        # Output has the input's shape/dtype: write the residual result back into
        # x's HBM buffer instead of allocating a second (B*T, C) buffer.
        input_output_aliases={0: 0},
        compiler_params=pltpu.CompilerParams(
            dimension_semantics=("parallel",),
            vmem_limit_bytes=vmem_limit_bytes,   # set explicitly on v5e if blocks grow
        ),
    )(x2d, w_qkv, w_proj, b_proj, g1, b1, g2, b2, w_f1, b_f1, w_f2, b_f2)
    return out2d.reshape(B, T, C)


def reference_block(x, w_qkv, w_proj, b_proj, g1, b1, g2, b2, w_f1, b_f1, w_f2, b_f2):
    """Pure-JAX reference matching the PyTorch Block in eval mode."""
    B, T, C = x.shape
    H, D = N_HEAD, C // N_HEAD
    hi = lax.Precision.HIGHEST

    def ln(h, g, b):
        mu = h.mean(-1, keepdims=True)
        var = ((h - mu) ** 2).mean(-1, keepdims=True)
        return (h - mu) / jnp.sqrt(var + LN_EPS) * g + b

    h1 = ln(x, g1, b1)
    q = jnp.matmul(h1, w_qkv[:, 0:C], precision=hi)
    k = jnp.matmul(h1, w_qkv[:, C:2 * C], precision=hi)
    v = jnp.matmul(h1, w_qkv[:, 2 * C:3 * C], precision=hi)
    qh = q.reshape(B, T, H, D).transpose(0, 2, 1, 3)
    kh = k.reshape(B, T, H, D).transpose(0, 2, 1, 3)
    vh = v.reshape(B, T, H, D).transpose(0, 2, 1, 3)
    wei = jnp.matmul(qh, jnp.swapaxes(kh, -1, -2), precision=hi) * (C ** -0.5)
    mask = jnp.tril(jnp.ones((T, T), dtype=bool))
    wei = jnp.where(mask, wei, -jnp.inf)
    wei = jax.nn.softmax(wei, axis=-1)
    attn = jnp.matmul(wei, vh, precision=hi).transpose(0, 2, 1, 3).reshape(B, T, C)
    x1 = x + jnp.matmul(attn, w_proj, precision=hi) + b_proj
    h2 = ln(x1, g2, b2)
    f = jax.nn.relu(jnp.matmul(h2, w_f1, precision=hi) + b_f1)
    return x1 + jnp.matmul(f, w_f2, precision=hi) + b_f2


if __name__ == "__main__":
    B, T, C = 2, 8, N_EMBD
    key = jax.random.PRNGKey(0)
    ks = jax.random.split(key, 12)
    x = jax.random.normal(ks[0], (B, T, C), dtype=jnp.float32)

    def lin(k, fan_in, shape):
        bound = 1.0 / (fan_in ** 0.5)
        return jax.random.uniform(k, shape, jnp.float32, -bound, bound)

    # Fused [W_q | W_k | W_v]; inside each (C, C) block head h owns columns h*D:(h+1)*D.
    w_qkv = lin(ks[1], C, (C, 3 * C))
    w_proj = lin(ks[2], C, (C, C))
    b_proj = lin(ks[3], C, (1, C))
    w_f1 = lin(ks[4], C, (C, 4 * C))
    b_f1 = lin(ks[5], C, (1, 4 * C))
    w_f2 = lin(ks[6], 4 * C, (4 * C, C))
    b_f2 = lin(ks[7], 4 * C, (1, C))
    g1 = 1.0 + 0.1 * jax.random.normal(ks[8], (1, C), jnp.float32)
    b1 = 0.1 * jax.random.normal(ks[9], (1, C), jnp.float32)
    g2 = 1.0 + 0.1 * jax.random.normal(ks[10], (1, C), jnp.float32)
    b2 = 0.1 * jax.random.normal(ks[11], (1, C), jnp.float32)

    args = (x, w_qkv, w_proj, b_proj, g1, b1, g2, b2, w_f1, b_f1, w_f2, b_f2)
    ref = jax.block_until_ready(reference_block(*args))   # reference first (x is aliased)
    out = jax.block_until_ready(block_forward(*args))

    assert out.shape == (B, T, C)
    err = float(jnp.max(jnp.abs(out - ref)))
    assert jnp.allclose(out, ref, atol=5e-3, rtol=5e-3), err
    print("KERNEL_OK")
</pallas_src>

<mosaic_0001>
module attributes {stable_mosaic.version = 11 : i64} {
  func.func @kernel(%arg0: i32, %arg1: memref<16x64xf32, #tpu.memory_space<vmem>>, %arg2: memref<64x192xf32, #tpu.memory_space<vmem>>, %arg3: memref<64x64xf32, #tpu.memory_space<vmem>>, %arg4: memref<1x64xf32, #tpu.memory_space<vmem>>, %arg5: memref<1x64xf32, #tpu.memory_space<vmem>>, %arg6: memref<1x64xf32, #tpu.memory_space<vmem>>, %arg7: memref<1x64xf32, #tpu.memory_space<vmem>>, %arg8: memref<1x64xf32, #tpu.memory_space<vmem>>, %arg9: memref<64x256xf32, #tpu.memory_space<vmem>>, %arg10: memref<1x256xf32, #tpu.memory_space<vmem>>, %arg11: memref<256x64xf32, #tpu.memory_space<vmem>>, %arg12: memref<1x64xf32, #tpu.memory_space<vmem>>, %arg13: memref<16x64xf32, #tpu.memory_space<vmem>>, %arg14: memref<16x64xf32, #tpu.memory_space<vmem>>) attributes {dimension_semantics = [#tpu.dimension_semantics<parallel>], iteration_bounds = array<i64: 1>, scalar_prefetch = 0 : i64, scratch_operands = 1 : i64, tpu.core_type = #tpu.core_type<tc>, window_params = [{transform_indices = @transform_0, window_bounds = array<i64: 16, 64>}, {pipeline_mode = #tpu.pipeline_mode<synchronous>, transform_indices = @transform_1, window_bounds = array<i64: 64, 192>}, {pipeline_mode = #tpu.pipeline_mode<synchronous>, transform_indices = @transform_2, window_bounds = array<i64: 64, 64>}, {pipeline_mode = #tpu.pipeline_mode<synchronous>, transform_indices = @transform_3, window_bounds = array<i64: 1, 64>}, {pipeline_mode = #tpu.pipeline_mode<synchronous>, transform_indices = @transform_4, window_bounds = array<i64: 1, 64>}, {pipeline_mode = #tpu.pipeline_mode<synchronous>, transform_indices = @transform_5, window_bounds = array<i64: 1, 64>}, {pipeline_mode = #tpu.pipeline_mode<synchronous>, transform_indices = @transform_6, window_bounds = array<i64: 1, 64>}, {pipeline_mode = #tpu.pipeline_mode<synchronous>, transform_indices = @transform_7, window_bounds = array<i64: 1, 64>}, {pipeline_mode = #tpu.pipeline_mode<synchronous>, transform_indices = @transform_8, window_bounds = array<i64: 64, 256>}, {pipeline_mode = #tpu.pipeline_mode<synchronous>, transform_indices = @transform_9, window_bounds = array<i64: 1, 256>}, {pipeline_mode = #tpu.pipeline_mode<synchronous>, transform_indices = @transform_10, window_bounds = array<i64: 256, 64>}, {pipeline_mode = #tpu.pipeline_mode<synchronous>, transform_indices = @transform_11, window_bounds = array<i64: 1, 64>}, {transform_indices = @transform_12, window_bounds = array<i64: 16, 64>}]} {
    %c0 = arith.constant 0 : index
    %c0_0 = arith.constant 0 : index
    %0 = vector.load %arg1[%c0, %c0_0] : memref<16x64xf32, #tpu.memory_space<vmem>>, vector<16x64xf32>
    %c0_1 = arith.constant 0 : index
    %c0_2 = arith.constant 0 : index
    %1 = vector.load %arg5[%c0_1, %c0_2] : memref<1x64xf32, #tpu.memory_space<vmem>>, vector<1x64xf32>
    %c0_3 = arith.constant 0 : index
    %c0_4 = arith.constant 0 : index
    %2 = vector.load %arg6[%c0_3, %c0_4] : memref<1x64xf32, #tpu.memory_space<vmem>>, vector<1x64xf32>
    %cst = arith.constant dense<0.000000e+00> : vector<16xf32>
    %3 = vector.multi_reduction <add>, %0, %cst [1] : vector<16x64xf32> to vector<16xf32>
    %4 = vector.shape_cast %3 : vector<16xf32> to vector<16x1xf32>
    %cst_5 = arith.constant 6.400000e+01 : f32
    %5 = vector.broadcast %cst_5 : f32 to vector<16x1xf32>
    %6 = arith.divf %4, %5 : vector<16x1xf32>
    %7 = vector.broadcast %6 : vector<16x1xf32> to vector<16x64xf32>
    %8 = arith.subf %0, %7 : vector<16x64xf32>
    %9 = arith.mulf %8, %8 : vector<16x64xf32>
    %cst_6 = arith.constant dense<0.000000e+00> : vector<16xf32>
    %10 = vector.multi_reduction <add>, %9, %cst_6 [1] : vector<16x64xf32> to vector<16xf32>
    %11 = vector.shape_cast %10 : vector<16xf32> to vector<16x1xf32>
    %cst_7 = arith.constant 6.400000e+01 : f32
    %12 = vector.broadcast %cst_7 : f32 to vector<16x1xf32>
    %13 = arith.divf %11, %12 : vector<16x1xf32>
    %14 = vector.broadcast %6 : vector<16x1xf32> to vector<16x64xf32>
    %15 = arith.subf %0, %14 : vector<16x64xf32>
    %cst_8 = arith.constant 9.99999974E-6 : f32
    %16 = vector.broadcast %cst_8 : f32 to vector<16x1xf32>
    %17 = arith.addf %13, %16 : vector<16x1xf32>
    %18 = math.rsqrt %17 : vector<16x1xf32>
    %19 = vector.broadcast %18 : vector<16x1xf32> to vector<16x64xf32>
    %20 = arith.mulf %15, %19 : vector<16x64xf32>
    %21 = vector.broadcast %1 : vector<1x64xf32> to vector<16x64xf32>
    %22 = arith.mulf %20, %21 : vector<16x64xf32>
    %23 = vector.broadcast %2 : vector<1x64xf32> to vector<16x64xf32>
    %24 = arith.addf %22, %23 : vector<16x64xf32>
    %c0_9 = arith.constant 0 : index
    %c0_10 = arith.constant 0 : index
    %25 = vector.load %arg2[%c0_9, %c0_10] : memref<64x192xf32, #tpu.memory_space<vmem>>, vector<64x192xf32>
    %cst_11 = arith.constant dense<0.000000e+00> : vector<16x192xf32>
    %26 = tpu.matmul %24, %25, %cst_11 {dimension_numbers = #tpu.dot_dimension_numbers<[1], [0], [0], [1], [0, 0, 1, 1], [], []>} : vector<16x64xf32>, vector<64x192xf32>, vector<16x192xf32> -> vector<16x192xf32>
    %27 = vector.extract_strided_slice %26 {offsets = [0, 0], sizes = [16, 64], strides = [1, 1]} : vector<16x192xf32> to vector<16x64xf32>
    %cst_12 = arith.constant 1.250000e-01 : f32
    %28 = vector.broadcast %cst_12 : f32 to vector<16x64xf32>
    %29 = arith.mulf %27, %28 : vector<16x64xf32>
    %30 = vector.extract_strided_slice %26 {offsets = [0, 128], sizes = [16, 64], strides = [1, 1]} : vector<16x192xf32> to vector<16x64xf32>
    %31 = vector.extract_strided_slice %26 {offsets = [0, 64], sizes = [16, 64], strides = [1, 1]} : vector<16x192xf32> to vector<16x64xf32>
    %32 = tpu.transpose %31, [1, 0] : vector<16x64xf32> -> vector<64x16xf32>
    %33 = tpu.iota {dimensions = array<i32: 0>} : vector<8x8xi32>
    %34 = tpu.iota {dimensions = array<i32: 1>} : vector<8x8xi32>
    %35 = arith.cmpi sle, %34, %33 : vector<8x8xi32>
    %36 = vector.extract_strided_slice %29 {offsets = [0, 0], sizes = [8, 64], strides = [1, 1]} : vector<16x64xf32> to vector<8x64xf32>
    %37 = vector.extract_strided_slice %30 {offsets = [0, 0], sizes = [8, 64], strides = [1, 1]} : vector<16x64xf32> to vector<8x64xf32>
    %38 = vector.extract_strided_slice %36 {offsets = [0, 0], sizes = [8, 8], strides = [1, 1]} : vector<8x64xf32> to vector<8x8xf32>
    %39 = vector.extract_strided_slice %32 {offsets = [0, 0], sizes = [8, 8], strides = [1, 1]} : vector<64x16xf32> to vector<8x8xf32>
    %cst_13 = arith.constant dense<0.000000e+00> : vector<8x8xf32>
    %40 = tpu.matmul %38, %39, %cst_13 {dimension_numbers = #tpu.dot_dimension_numbers<[1], [0], [0], [1], [0, 0, 1, 1], [], []>} : vector<8x8xf32>, vector<8x8xf32>, vector<8x8xf32> -> vector<8x8xf32>
    %cst_14 = arith.constant -1.000000e+30 : f32
    %41 = vector.broadcast %cst_14 : f32 to vector<8x8xf32>
    %42 = arith.select %35, %40, %41 : vector<8x8xi1>, vector<8x8xf32>
    %cst_15 = arith.constant dense<0xFF800000> : vector<8xf32>
    %43 = vector.multi_reduction <maximumf>, %42, %cst_15 [1] : vector<8x8xf32> to vector<8xf32>
    %44 = vector.shape_cast %43 : vector<8xf32> to vector<8x1xf32>
    %45 = vector.broadcast %44 : vector<8x1xf32> to vector<8x8xf32>
    %46 = arith.subf %42, %45 : vector<8x8xf32>
    %47 = math.exp %46 : vector<8x8xf32>
    %cst_16 = arith.constant dense<0.000000e+00> : vector<8xf32>
    %48 = vector.multi_reduction <add>, %47, %cst_16 [1] : vector<8x8xf32> to vector<8xf32>
    %49 = vector.shape_cast %48 : vector<8xf32> to vector<8x1xf32>
    %50 = vector.broadcast %49 : vector<8x1xf32> to vector<8x8xf32>
    %51 = arith.divf %47, %50 : vector<8x8xf32>
    %52 = vector.extract_strided_slice %37 {offsets = [0, 0], sizes = [8, 8], strides = [1, 1]} : vector<8x64xf32> to vector<8x8xf32>
    %cst_17 = arith.constant dense<0.000000e+00> : vector<8x8xf32>
    %53 = tpu.matmul %51, %52, %cst_17 {dimension_numbers = #tpu.dot_dimension_numbers<[1], [0], [0], [1], [0, 0, 1, 1], [], []>} : vector<8x8xf32>, vector<8x8xf32>, vector<8x8xf32> -> vector<8x8xf32>
    %c0_18 = arith.constant 0 : index
    %c0_19 = arith.constant 0 : index
    %54 = vector.load %arg14[%c0_18, %c0_19] : memref<16x64xf32, #tpu.memory_space<vmem>>, vector<8x8xf32>
    tpu.vector_store %arg14[%c0_18, %c0_19], %53 {strides = array<i32>} : memref<16x64xf32, #tpu.memory_space<vmem>>, vector<8x8xf32>,
    %55 = vector.extract_strided_slice %36 {offsets = [0, 8], sizes = [8, 8], strides = [1, 1]} : vector<8x64xf32> to vector<8x8xf32>
    %56 = vector.extract_strided_slice %32 {offsets = [8, 0], sizes = [8, 8], strides = [1, 1]} : vector<64x16xf32> to vector<8x8xf32>
    %cst_20 = arith.constant dense<0.000000e+00> : vector<8x8xf32>
    %57 = tpu.matmul %55, %56, %cst_20 {dimension_numbers = #tpu.dot_dimension_numbers<[1], [0], [0], [1], [0, 0, 1, 1], [], []>} : vector<8x8xf32>, vector<8x8xf32>, vector<8x8xf32> -> vector<8x8xf32>
    %cst_21 = arith.constant -1.000000e+30 : f32
    %58 = vector.broadcast %cst_21 : f32 to vector<8x8xf32>
    %59 = arith.select %35, %57, %58 : vector<8x8xi1>, vector<8x8xf32>
    %cst_22 = arith.constant dense<0xFF800000> : vector<8xf32>
    %60 = vector.multi_reduction <maximumf>, %59, %cst_22 [1] : vector<8x8xf32> to vector<8xf32>
    %61 = vector.shape_cast %60 : vector<8xf32> to vector<8x1xf32>
    %62 = vector.broadcast %61 : vector<8x1xf32> to vector<8x8xf32>
    %63 = arith.subf %59, %62 : vector<8x8xf32>
    %64 = math.exp %63 : vector<8x8xf32>
    %cst_23 = arith.constant dense<0.000000e+00> : vector<8xf32>
    %65 = vector.multi_reduction <add>, %64, %cst_23 [1] : vector<8x8xf32> to vector<8xf32>
    %66 = vector.shape_cast %65 : vector<8xf32> to vector<8x1xf32>
    %67 = vector.broadcast %66 : vector<8x1xf32> to vector<8x8xf32>
    %68 = arith.divf %64, %67 : vector<8x8xf32>
    %69 = vector.extract_strided_slice %37 {offsets = [0, 8], sizes = [8, 8], strides = [1, 1]} : vector<8x64xf32> to vector<8x8xf32>
    %cst_24 = arith.constant dense<0.000000e+00> : vector<8x8xf32>
    %70 = tpu.matmul %68, %69, %cst_24 {dimension_numbers = #tpu.dot_dimension_numbers<[1], [0], [0], [1], [0, 0, 1, 1], [], []>} : vector<8x8xf32>, vector<8x8xf32>, vector<8x8xf32> -> vector<8x8xf32>
    %c0_25 = arith.constant 0 : index
    %c8 = arith.constant 8 : index
    %71 = vector.load %arg14[%c0_25, %c8] : memref<16x64xf32, #tpu.memory_space<vmem>>, vector<8x8xf32>
    tpu.vector_store %arg14[%c0_25, %c8], %70 {strides = array<i32>} : memref<16x64xf32, #tpu.memory_space<vmem>>, vector<8x8xf32>,
    %72 = vector.extract_strided_slice %36 {offsets = [0, 16], sizes = [8, 8], strides = [1, 1]} : vector<8x64xf32> to vector<8x8xf32>
    %73 = vector.extract_strided_slice %32 {offsets = [16, 0], sizes = [8, 8], strides = [1, 1]} : vector<64x16xf32> to vector<8x8xf32>
    %cst_26 = arith.constant dense<0.000000e+00> : vector<8x8xf32>
    %74 = tpu.matmul %72, %73, %cst_26 {dimension_numbers = #tpu.dot_dimension_numbers<[1], [0], [0], [1], [0, 0, 1, 1], [], []>} : vector<8x8xf32>, vector<8x8xf32>, vector<8x8xf32> -> vector<8x8xf32>
    %cst_27 = arith.constant -1.000000e+30 : f32
    %75 = vector.broadcast %cst_27 : f32 to vector<8x8xf32>
    %76 = arith.select %35, %74, %75 : vector<8x8xi1>, vector<8x8xf32>
    %cst_28 = arith.constant dense<0xFF800000> : vector<8xf32>
    %77 = vector.multi_reduction <maximumf>, %76, %cst_28 [1] : vector<8x8xf32> to vector<8xf32>
    %78 = vector.shape_cast %77 : vector<8xf32> to vector<8x1xf32>
    %79 = vector.broadcast %78 : vector<8x1xf32> to vector<8x8xf32>
    %80 = arith.subf %76, %79 : vector<8x8xf32>
    %81 = math.exp %80 : vector<8x8xf32>
    %cst_29 = arith.constant dense<0.000000e+00> : vector<8xf32>
    %82 = vector.multi_reduction <add>, %81, %cst_29 [1] : vector<8x8xf32> to vector<8xf32>
    %83 = vector.shape_cast %82 : vector<8xf32> to vector<8x1xf32>
    %84 = vector.broadcast %83 : vector<8x1xf32> to vector<8x8xf32>
    %85 = arith.divf %81, %84 : vector<8x8xf32>
    %86 = vector.extract_strided_slice %37 {offsets = [0, 16], sizes = [8, 8], strides = [1, 1]} : vector<8x64xf32> to vector<8x8xf32>
    %cst_30 = arith.constant dense<0.000000e+00> : vector<8x8xf32>
    %87 = tpu.matmul %85, %86, %cst_30 {dimension_numbers = #tpu.dot_dimension_numbers<[1], [0], [0], [1], [0, 0, 1, 1], [], []>} : vector<8x8xf32>, vector<8x8xf32>, vector<8x8xf32> -> vector<8x8xf32>
    %c0_31 = arith.constant 0 : index
    %c16 = arith.constant 16 : index
    %88 = vector.load %arg14[%c0_31, %c16] : memref<16x64xf32, #tpu.memory_space<vmem>>, vector<8x8xf32>
    tpu.vector_store %arg14[%c0_31, %c16], %87 {strides = array<i32>} : memref<16x64xf32, #tpu.memory_space<vmem>>, vector<8x8xf32>,
    %89 = vector.extract_strided_slice %36 {offsets = [0, 24], sizes = [8, 8], strides = [1, 1]} : vector<8x64xf32> to vector<8x8xf32>
    %90 = vector.extract_strided_slice %32 {offsets = [24, 0], sizes = [8, 8], strides = [1, 1]} : vector<64x16xf32> to vector<8x8xf32>
    %cst_32 = arith.constant dense<0.000000e+00> : vector<8x8xf32>
    %91 = tpu.matmul %89, %90, %cst_32 {dimension_numbers = #tpu.dot_dimension_numbers<[1], [0], [0], [1], [0, 0, 1, 1], [], []>} : vector<8x8xf32>, vector<8x8xf32>, vector<8x8xf32> -> vector<8x8xf32>
    %cst_33 = arith.constant -1.000000e+30 : f32
    %92 = vector.broadcast %cst_33 : f32 to vector<8x8xf32>
    %93 = arith.select %35, %91, %92 : vector<8x8xi1>, vector<8x8xf32>
    %cst_34 = arith.constant dense<0xFF800000> : vector<8xf32>
    %94 = vector.multi_reduction <maximumf>, %93, %cst_34 [1] : vector<8x8xf32> to vector<8xf32>
    %95 = vector.shape_cast %94 : vector<8xf32> to vector<8x1xf32>
    %96 = vector.broadcast %95 : vector<8x1xf32> to vector<8x8xf32>
    %97 = arith.subf %93, %96 : vector<8x8xf32>
    %98 = math.exp %97 : vector<8x8xf32>
    %cst_35 = arith.constant dense<0.000000e+00> : vector<8xf32>
    %99 = vector.multi_reduction <add>, %98, %cst_35 [1] : vector<8x8xf32> to vector<8xf32>
    %100 = vector.shape_cast %99 : vector<8xf32> to vector<8x1xf32>
    %101 = vector.broadcast %100 : vector<8x1xf32> to vector<8x8xf32>
    %102 = arith.divf %98, %101 : vector<8x8xf32>
    %103 = vector.extract_strided_slice %37 {offsets = [0, 24], sizes = [8, 8], strides = [1, 1]} : vector<8x64xf32> to vector<8x8xf32>
    %cst_36 = arith.constant dense<0.000000e+00> : vector<8x8xf32>
    %104 = tpu.matmul %102, %103, %cst_36 {dimension_numbers = #tpu.dot_dimension_numbers<[1], [0], [0], [1], [0, 0, 1, 1], [], []>} : vector<8x8xf32>, vector<8x8xf32>, vector<8x8xf32> -> vector<8x8xf32>
    %c0_37 = arith.constant 0 : index
    %c24 = arith.constant 24 : index
    %105 = vector.load %arg14[%c0_37, %c24] : memref<16x64xf32, #tpu.memory_space<vmem>>, vector<8x8xf32>
    tpu.vector_store %arg14[%c0_37, %c24], %104 {strides = array<i32>} : memref<16x64xf32, #tpu.memory_space<vmem>>, vector<8x8xf32>,
    %106 = vector.extract_strided_slice %36 {offsets = [0, 32], sizes = [8, 8], strides = [1, 1]} : vector<8x64xf32> to vector<8x8xf32>
    %107 = vector.extract_strided_slice %32 {offsets = [32, 0], sizes = [8, 8], strides = [1, 1]} : vector<64x16xf32> to vector<8x8xf32>
    %cst_38 = arith.constant dense<0.000000e+00> : vector<8x8xf32>
    %108 = tpu.matmul %106, %107, %cst_38 {dimension_numbers = #tpu.dot_dimension_numbers<[1], [0], [0], [1], [0, 0, 1, 1], [], []>} : vector<8x8xf32>, vector<8x8xf32>, vector<8x8xf32> -> vector<8x8xf32>
    %cst_39 = arith.constant -1.000000e+30 : f32
    %109 = vector.broadcast %cst_39 : f32 to vector<8x8xf32>
    %110 = arith.select %35, %108, %109 : vector<8x8xi1>, vector<8x8xf32>
    %cst_40 = arith.constant dense<0xFF800000> : vector<8xf32>
    %111 = vector.multi_reduction <maximumf>, %110, %cst_40 [1] : vector<8x8xf32> to vector<8xf32>
    %112 = vector.shape_cast %111 : vector<8xf32> to vector<8x1xf32>
    %113 = vector.broadcast %112 : vector<8x1xf32> to vector<8x8xf32>
    %114 = arith.subf %110, %113 : vector<8x8xf32>
    %115 = math.exp %114 : vector<8x8xf32>
    %cst_41 = arith.constant dense<0.000000e+00> : vector<8xf32>
    %116 = vector.multi_reduction <add>, %115, %cst_41 [1] : vector<8x8xf32> to vector<8xf32>
    %117 = vector.shape_cast %116 : vector<8xf32> to vector<8x1xf32>
    %118 = vector.broadcast %117 : vector<8x1xf32> to vector<8x8xf32>
    %119 = arith.divf %115, %118 : vector<8x8xf32>
    %120 = vector.extract_strided_slice %37 {offsets = [0, 32], sizes = [8, 8], strides = [1, 1]} : vector<8x64xf32> to vector<8x8xf32>
    %cst_42 = arith.constant dense<0.000000e+00> : vector<8x8xf32>
    %121 = tpu.matmul %119, %120, %cst_42 {dimension_numbers = #tpu.dot_dimension_numbers<[1], [0], [0], [1], [0, 0, 1, 1], [], []>} : vector<8x8xf32>, vector<8x8xf32>, vector<8x8xf32> -> vector<8x8xf32>
    %c0_43 = arith.constant 0 : index
    %c32 = arith.constant 32 : index
    %122 = vector.load %arg14[%c0_43, %c32] : memref<16x64xf32, #tpu.memory_space<vmem>>, vector<8x8xf32>
    tpu.vector_store %arg14[%c0_43, %c32], %121 {strides = array<i32>} : memref<16x64xf32, #tpu.memory_space<vmem>>, vector<8x8xf32>,
    %123 = vector.extract_strided_slice %36 {offsets = [0, 40], sizes = [8, 8], strides = [1, 1]} : vector<8x64xf32> to vector<8x8xf32>
    %124 = vector.extract_strided_slice %32 {offsets = [40, 0], sizes = [8, 8], strides = [1, 1]} : vector<64x16xf32> to vector<8x8xf32>
    %cst_44 = arith.constant dense<0.000000e+00> : vector<8x8xf32>
    %125 = tpu.matmul %123, %124, %cst_44 {dimension_numbers = #tpu.dot_dimension_numbers<[1], [0], [0], [1], [0, 0, 1, 1], [], []>} : vector<8x8xf32>, vector<8x8xf32>, vector<8x8xf32> -> vector<8x8xf32>
    %cst_45 = arith.constant -1.000000e+30 : f32
    %126 = vector.broadcast %cst_45 : f32 to vector<8x8xf32>
    %127 = arith.select %35, %125, %126 : vector<8x8xi1>, vector<8x8xf32>
    %cst_46 = arith.constant dense<0xFF800000> : vector<8xf32>
    %128 = vector.multi_reduction <maximumf>, %127, %cst_46 [1] : vector<8x8xf32> to vector<8xf32>
    %129 = vector.shape_cast %128 : vector<8xf32> to vector<8x1xf32>
    %130 = vector.broadcast %129 : vector<8x1xf32> to vector<8x8xf32>
    %131 = arith.subf %127, %130 : vector<8x8xf32>
    %132 = math.exp %131 : vector<8x8xf32>
    %cst_47 = arith.constant dense<0.000000e+00> : vector<8xf32>
    %133 = vector.multi_reduction <add>, %132, %cst_47 [1] : vector<8x8xf32> to vector<8xf32>
    %134 = vector.shape_cast %133 : vector<8xf32> to vector<8x1xf32>
    %135 = vector.broadcast %134 : vector<8x1xf32> to vector<8x8xf32>
    %136 = arith.divf %132, %135 : vector<8x8xf32>
    %137 = vector.extract_strided_slice %37 {offsets = [0, 40], sizes = [8, 8], strides = [1, 1]} : vector<8x64xf32> to vector<8x8xf32>
    %cst_48 = arith.constant dense<0.000000e+00> : vector<8x8xf32>
    %138 = tpu.matmul %136, %137, %cst_48 {dimension_numbers = #tpu.dot_dimension_numbers<[1], [0], [0], [1], [0, 0, 1, 1], [], []>} : vector<8x8xf32>, vector<8x8xf32>, vector<8x8xf32> -> vector<8x8xf32>
    %c0_49 = arith.constant 0 : index
    %c40 = arith.constant 40 : index
    %139 = vector.load %arg14[%c0_49, %c40] : memref<16x64xf32, #tpu.memory_space<vmem>>, vector<8x8xf32>
    tpu.vector_store %arg14[%c0_49, %c40], %138 {strides = array<i32>} : memref<16x64xf32, #tpu.memory_space<vmem>>, vector<8x8xf32>,
    %140 = vector.extract_strided_slice %36 {offsets = [0, 48], sizes = [8, 8], strides = [1, 1]} : vector<8x64xf32> to vector<8x8xf32>
    %141 = vector.extract_strided_slice %32 {offsets = [48, 0], sizes = [8, 8], strides = [1, 1]} : vector<64x16xf32> to vector<8x8xf32>
    %cst_50 = arith.constant dense<0.000000e+00> : vector<8x8xf32>
    %142 = tpu.matmul %140, %141, %cst_50 {dimension_numbers = #tpu.dot_dimension_numbers<[1], [0], [0], [1], [0, 0, 1, 1], [], []>} : vector<8x8xf32>, vector<8x8xf32>, vector<8x8xf32> -> vector<8x8xf32>
    %cst_51 = arith.constant -1.000000e+30 : f32
    %143 = vector.broadcast %cst_51 : f32 to vector<8x8xf32>
    %144 = arith.select %35, %142, %143 : vector<8x8xi1>, vector<8x8xf32>
    %cst_52 = arith.constant dense<0xFF800000> : vector<8xf32>
    %145 = vector.multi_reduction <maximumf>, %144, %cst_52 [1] : vector<8x8xf32> to vector<8xf32>
    %146 = vector.shape_cast %145 : vector<8xf32> to vector<8x1xf32>
    %147 = vector.broadcast %146 : vector<8x1xf32> to vector<8x8xf32>
    %148 = arith.subf %144, %147 : vector<8x8xf32>
    %149 = math.exp %148 : vector<8x8xf32>
    %cst_53 = arith.constant dense<0.000000e+00> : vector<8xf32>
    %150 = vector.multi_reduction <add>, %149, %cst_53 [1] : vector<8x8xf32> to vector<8xf32>
    %151 = vector.shape_cast %150 : vector<8xf32> to vector<8x1xf32>
    %152 = vector.broadcast %151 : vector<8x1xf32> to vector<8x8xf32>
    %153 = arith.divf %149, %152 : vector<8x8xf32>
    %154 = vector.extract_strided_slice %37 {offsets = [0, 48], sizes = [8, 8], strides = [1, 1]} : vector<8x64xf32> to vector<8x8xf32>
    %cst_54 = arith.constant dense<0.000000e+00> : vector<8x8xf32>
    %155 = tpu.matmul %153, %154, %cst_54 {dimension_numbers = #tpu.dot_dimension_numbers<[1], [0], [0], [1], [0, 0, 1, 1], [], []>} : vector<8x8xf32>, vector<8x8xf32>, vector<8x8xf32> -> vector<8x8xf32>
    %c0_55 = arith.constant 0 : index
    %c48 = arith.constant 48 : index
    %156 = vector.load %arg14[%c0_55, %c48] : memref<16x64xf32, #tpu.memory_space<vmem>>, vector<8x8xf32>
    tpu.vector_store %arg14[%c0_55, %c48], %155 {strides = array<i32>} : memref<16x64xf32, #tpu.memory_space<vmem>>, vector<8x8xf32>,
    %157 = vector.extract_strided_slice %36 {offsets = [0, 56], sizes = [8, 8], strides = [1, 1]} : vector<8x64xf32> to vector<8x8xf32>
    %158 = vector.extract_strided_slice %32 {offsets = [56, 0], sizes = [8, 8], strides = [1, 1]} : vector<64x16xf32> to vector<8x8xf32>
    %cst_56 = arith.constant dense<0.000000e+00> : vector<8x8xf32>
    %159 = tpu.matmul %157, %158, %cst_56 {dimension_numbers = #tpu.dot_dimension_numbers<[1], [0], [0], [1], [0, 0, 1, 1], [], []>} : vector<8x8xf32>, vector<8x8xf32>, vector<8x8xf32> -> vector<8x8xf32>
    %cst_57 = arith.constant -1.000000e+30 : f32
    %160 = vector.broadcast %cst_57 : f32 to vector<8x8xf32>
    %161 = arith.select %35, %159, %160 : vector<8x8xi1>, vector<8x8xf32>
    %cst_58 = arith.constant dense<0xFF800000> : vector<8xf32>
    %162 = vector.multi_reduction <maximumf>, %161, %cst_58 [1] : vector<8x8xf32> to vector<8xf32>
    %163 = vector.shape_cast %162 : vector<8xf32> to vector<8x1xf32>
    %164 = vector.broadcast %163 : vector<8x1xf32> to vector<8x8xf32>
    %165 = arith.subf %161, %164 : vector<8x8xf32>
    %166 = math.exp %165 : vector<8x8xf32>
    %cst_59 = arith.constant dense<0.000000e+00> : vector<8xf32>
    %167 = vector.multi_reduction <add>, %166, %cst_59 [1] : vector<8x8xf32> to vector<8xf32>
    %168 = vector.shape_cast %167 : vector<8xf32> to vector<8x1xf32>
    %169 = vector.broadcast %168 : vector<8x1xf32> to vector<8x8xf32>
    %170 = arith.divf %166, %169 : vector<8x8xf32>
    %171 = vector.extract_strided_slice %37 {offsets = [0, 56], sizes = [8, 8], strides = [1, 1]} : vector<8x64xf32> to vector<8x8xf32>
    %cst_60 = arith.constant dense<0.000000e+00> : vector<8x8xf32>
    %172 = tpu.matmul %170, %171, %cst_60 {dimension_numbers = #tpu.dot_dimension_numbers<[1], [0], [0], [1], [0, 0, 1, 1], [], []>} : vector<8x8xf32>, vector<8x8xf32>, vector<8x8xf32> -> vector<8x8xf32>
    %c0_61 = arith.constant 0 : index
    %c56 = arith.constant 56 : index
    %173 = vector.load %arg14[%c0_61, %c56] : memref<16x64xf32, #tpu.memory_space<vmem>>, vector<8x8xf32>
    tpu.vector_store %arg14[%c0_61, %c56], %172 {strides = array<i32>} : memref<16x64xf32, #tpu.memory_space<vmem>>, vector<8x8xf32>,
    %174 = vector.extract_strided_slice %29 {offsets = [8, 0], sizes = [8, 64], strides = [1, 1]} : vector<16x64xf32> to vector<8x64xf32>
    %175 = vector.extract_strided_slice %30 {offsets = [8, 0], sizes = [8, 64], strides = [1, 1]} : vector<16x64xf32> to vector<8x64xf32>
    %176 = vector.extract_strided_slice %174 {offsets = [0, 0], sizes = [8, 8], strides = [1, 1]} : vector<8x64xf32> to vector<8x8xf32>
    %177 = vector.extract_strided_slice %32 {offsets = [0, 8], sizes = [8, 8], strides = [1, 1]} : vector<64x16xf32> to vector<8x8xf32>
    %cst_62 = arith.constant dense<0.000000e+00> : vector<8x8xf32>
    %178 = tpu.matmul %176, %177, %cst_62 {dimension_numbers = #tpu.dot_dimension_numbers<[1], [0], [0], [1], [0, 0, 1, 1], [], []>} : vector<8x8xf32>, vector<8x8xf32>, vector<8x8xf32> -> vector<8x8xf32>
    %cst_63 = arith.constant -1.000000e+30 : f32
    %179 = vector.broadcast %cst_63 : f32 to vector<8x8xf32>
    %180 = arith.select %35, %178, %179 : vector<8x8xi1>, vector<8x8xf32>
    %cst_64 = arith.constant dense<0xFF800000> : vector<8xf32>
    %181 = vector.multi_reduction <maximumf>, %180, %cst_64 [1] : vector<8x8xf32> to vector<8xf32>
    %182 = vector.shape_cast %181 : vector<8xf32> to vector<8x1xf32>
    %183 = vector.broadcast %182 : vector<8x1xf32> to vector<8x8xf32>
    %184 = arith.subf %180, %183 : vector<8x8xf32>
    %185 = math.exp %184 : vector<8x8xf32>
    %cst_65 = arith.constant dense<0.000000e+00> : vector<8xf32>
    %186 = vector.multi_reduction <add>, %185, %cst_65 [1] : vector<8x8xf32> to vector<8xf32>
    %187 = vector.shape_cast %186 : vector<8xf32> to vector<8x1xf32>
    %188 = vector.broadcast %187 : vector<8x1xf32> to vector<8x8xf32>
    %189 = arith.divf %185, %188 : vector<8x8xf32>
    %190 = vector.extract_strided_slice %175 {offsets = [0, 0], sizes = [8, 8], strides = [1, 1]} : vector<8x64xf32> to vector<8x8xf32>
    %cst_66 = arith.constant dense<0.000000e+00> : vector<8x8xf32>
    %191 = tpu.matmul %189, %190, %cst_66 {dimension_numbers = #tpu.dot_dimension_numbers<[1], [0], [0], [1], [0, 0, 1, 1], [], []>} : vector<8x8xf32>, vector<8x8xf32>, vector<8x8xf32> -> vector<8x8xf32>
    %c8_67 = arith.constant 8 : index
    %c0_68 = arith.constant 0 : index
    %192 = vector.load %arg14[%c8_67, %c0_68] : memref<16x64xf32, #tpu.memory_space<vmem>>, vector<8x8xf32>
    tpu.vector_store %arg14[%c8_67, %c0_68], %191 {strides = array<i32>} : memref<16x64xf32, #tpu.memory_space<vmem>>, vector<8x8xf32>,
    %193 = vector.extract_strided_slice %174 {offsets = [0, 8], sizes = [8, 8], strides = [1, 1]} : vector<8x64xf32> to vector<8x8xf32>
    %194 = vector.extract_strided_slice %32 {offsets = [8, 8], sizes = [8, 8], strides = [1, 1]} : vector<64x16xf32> to vector<8x8xf32>
    %cst_69 = arith.constant dense<0.000000e+00> : vector<8x8xf32>
    %195 = tpu.matmul %193, %194, %cst_69 {dimension_numbers = #tpu.dot_dimension_numbers<[1], [0], [0], [1], [0, 0, 1, 1], [], []>} : vector<8x8xf32>, vector<8x8xf32>, vector<8x8xf32> -> vector<8x8xf32>
    %cst_70 = arith.constant -1.000000e+30 : f32
    %196 = vector.broadcast %cst_70 : f32 to vector<8x8xf32>
    %197 = arith.select %35, %195, %196 : vector<8x8xi1>, vector<8x8xf32>
    %cst_71 = arith.constant dense<0xFF800000> : vector<8xf32>
    %198 = vector.multi_reduction <maximumf>, %197, %cst_71 [1] : vector<8x8xf32> to vector<8xf32>
    %199 = vector.shape_cast %198 : vector<8xf32> to vector<8x1xf32>
    %200 = vector.broadcast %199 : vector<8x1xf32> to vector<8x8xf32>
    %201 = arith.subf %197, %200 : vector<8x8xf32>
    %202 = math.exp %201 : vector<8x8xf32>
    %cst_72 = arith.constant dense<0.000000e+00> : vector<8xf32>
    %203 = vector.multi_reduction <add>, %202, %cst_72 [1] : vector<8x8xf32> to vector<8xf32>
    %204 = vector.shape_cast %203 : vector<8xf32> to vector<8x1xf32>
    %205 = vector.broadcast %204 : vector<8x1xf32> to vector<8x8xf32>
    %206 = arith.divf %202, %205 : vector<8x8xf32>
    %207 = vector.extract_strided_slice %175 {offsets = [0, 8], sizes = [8, 8], strides = [1, 1]} : vector<8x64xf32> to vector<8x8xf32>
    %cst_73 = arith.constant dense<0.000000e+00> : vector<8x8xf32>
    %208 = tpu.matmul %206, %207, %cst_73 {dimension_numbers = #tpu.dot_dimension_numbers<[1], [0], [0], [1], [0, 0, 1, 1], [], []>} : vector<8x8xf32>, vector<8x8xf32>, vector<8x8xf32> -> vector<8x8xf32>
    %c8_74 = arith.constant 8 : index
    %c8_75 = arith.constant 8 : index
    %209 = vector.load %arg14[%c8_74, %c8_75] : memref<16x64xf32, #tpu.memory_space<vmem>>, vector<8x8xf32>
    tpu.vector_store %arg14[%c8_74, %c8_75], %208 {strides = array<i32>} : memref<16x64xf32, #tpu.memory_space<vmem>>, vector<8x8xf32>,
    %210 = vector.extract_strided_slice %174 {offsets = [0, 16], sizes = [8, 8], strides = [1, 1]} : vector<8x64xf32> to vector<8x8xf32>
    %211 = vector.extract_strided_slice %32 {offsets = [16, 8], sizes = [8, 8], strides = [1, 1]} : vector<64x16xf32> to vector<8x8xf32>
    %cst_76 = arith.constant dense<0.000000e+00> : vector<8x8xf32>
    %212 = tpu.matmul %210, %211, %cst_76 {dimension_numbers = #tpu.dot_dimension_numbers<[1], [0], [0], [1], [0, 0, 1, 1], [], []>} : vector<8x8xf32>, vector<8x8xf32>, vector<8x8xf32> -> vector<8x8xf32>
    %cst_77 = arith.constant -1.000000e+30 : f32
    %213 = vector.broadcast %cst_77 : f32 to vector<8x8xf32>
    %214 = arith.select %35, %212, %213 : vector<8x8xi1>, vector<8x8xf32>
    %cst_78 = arith.constant dense<0xFF800000> : vector<8xf32>
    %215 = vector.multi_reduction <maximumf>, %214, %cst_78 [1] : vector<8x8xf32> to vector<8xf32>
    %216 = vector.shape_cast %215 : vector<8xf32> to vector<8x1xf32>
    %217 = vector.broadcast %216 : vector<8x1xf32> to vector<8x8xf32>
    %218 = arith.subf %214, %217 : vector<8x8xf32>
    %219 = math.exp %218 : vector<8x8xf32>
    %cst_79 = arith.constant dense<0.000000e+00> : vector<8xf32>
    %220 = vector.multi_reduction <add>, %219, %cst_79 [1] : vector<8x8xf32> to vector<8xf32>
    %221 = vector.shape_cast %220 : vector<8xf32> to vector<8x1xf32>
    %222 = vector.broadcast %221 : vector<8x1xf32> to vector<8x8xf32>
    %223 = arith.divf %219, %222 : vector<8x8xf32>
    %224 = vector.extract_strided_slice %175 {offsets = [0, 16], sizes = [8, 8], strides = [1, 1]} : vector<8x64xf32> to vector<8x8xf32>
    %cst_80 = arith.constant dense<0.000000e+00> : vector<8x8xf32>
    %225 = tpu.matmul %223, %224, %cst_80 {dimension_numbers = #tpu.dot_dimension_numbers<[1], [0], [0], [1], [0, 0, 1, 1], [], []>} : vector<8x8xf32>, vector<8x8xf32>, vector<8x8xf32> -> vector<8x8xf32>
    %c8_81 = arith.constant 8 : index
    %c16_82 = arith.constant 16 : index
    %226 = vector.load %arg14[%c8_81, %c16_82] : memref<16x64xf32, #tpu.memory_space<vmem>>, vector<8x8xf32>
    tpu.vector_store %arg14[%c8_81, %c16_82], %225 {strides = array<i32>} : memref<16x64xf32, #tpu.memory_space<vmem>>, vector<8x8xf32>,
    %227 = vector.extract_strided_slice %174 {offsets = [0, 24], sizes = [8, 8], strides = [1, 1]} : vector<8x64xf32> to vector<8x8xf32>
    %228 = vector.extract_strided_slice %32 {offsets = [24, 8], sizes = [8, 8], strides = [1, 1]} : vector<64x16xf32> to vector<8x8xf32>
    %cst_83 = arith.constant dense<0.000000e+00> : vector<8x8xf32>
    %229 = tpu.matmul %227, %228, %cst_83 {dimension_numbers = #tpu.dot_dimension_numbers<[1], [0], [0], [1], [0, 0, 1, 1], [], []>} : vector<8x8xf32>, vector<8x8xf32>, vector<8x8xf32> -> vector<8x8xf32>
    %cst_84 = arith.constant -1.000000e+30 : f32
    %230 = vector.broadcast %cst_84 : f32 to vector<8x8xf32>
    %231 = arith.select %35, %229, %230 : vector<8x8xi1>, vector<8x8xf32>
    %cst_85 = arith.constant dense<0xFF800000> : vector<8xf32>
    %232 = vector.multi_reduction <maximumf>, %231, %cst_85 [1] : vector<8x8xf32> to vector<8xf32>
    %233 = vector.shape_cast %232 : vector<8xf32> to vector<8x1xf32>
    %234 = vector.broadcast %233 : vector<8x1xf32> to vector<8x8xf32>
    %235 = arith.subf %231, %234 : vector<8x8xf32>
    %236 = math.exp %235 : vector<8x8xf32>
    %cst_86 = arith.constant dense<0.000000e+00> : vector<8xf32>
    %237 = vector.multi_reduction <add>, %236, %cst_86 [1] : vector<8x8xf32> to vector<8xf32>
    %238 = vector.shape_cast %237 : vector<8xf32> to vector<8x1xf32>
    %239 = vector.broadcast %238 : vector<8x1xf32> to vector<8x8xf32>
    %240 = arith.divf %236, %239 : vector<8x8xf32>
    %241 = vector.extract_strided_slice %175 {offsets = [0, 24], sizes = [8, 8], strides = [1, 1]} : vector<8x64xf32> to vector<8x8xf32>
    %cst_87 = arith.constant dense<0.000000e+00> : vector<8x8xf32>
    %242 = tpu.matmul %240, %241, %cst_87 {dimension_numbers = #tpu.dot_dimension_numbers<[1], [0], [0], [1], [0, 0, 1, 1], [], []>} : vector<8x8xf32>, vector<8x8xf32>, vector<8x8xf32> -> vector<8x8xf32>
    %c8_88 = arith.constant 8 : index
    %c24_89 = arith.constant 24 : index
    %243 = vector.load %arg14[%c8_88, %c24_89] : memref<16x64xf32, #tpu.memory_space<vmem>>, vector<8x8xf32>
    tpu.vector_store %arg14[%c8_88, %c24_89], %242 {strides = array<i32>} : memref<16x64xf32, #tpu.memory_space<vmem>>, vector<8x8xf32>,
    %244 = vector.extract_strided_slice %174 {offsets = [0, 32], sizes = [8, 8], strides = [1, 1]} : vector<8x64xf32> to vector<8x8xf32>
    %245 = vector.extract_strided_slice %32 {offsets = [32, 8], sizes = [8, 8], strides = [1, 1]} : vector<64x16xf32> to vector<8x8xf32>
    %cst_90 = arith.constant dense<0.000000e+00> : vector<8x8xf32>
    %246 = tpu.matmul %244, %245, %cst_90 {dimension_numbers = #tpu.dot_dimension_numbers<[1], [0], [0], [1], [0, 0, 1, 1], [], []>} : vector<8x8xf32>, vector<8x8xf32>, vector<8x8xf32> -> vector<8x8xf32>
    %cst_91 = arith.constant -1.000000e+30 : f32
    %247 = vector.broadcast %cst_91 : f32 to vector<8x8xf32>
    %248 = arith.select %35, %246, %247 : vector<8x8xi1>, vector<8x8xf32>
    %cst_92 = arith.constant dense<0xFF800000> : vector<8xf32>
    %249 = vector.multi_reduction <maximumf>, %248, %cst_92 [1] : vector<8x8xf32> to vector<8xf32>
    %250 = vector.shape_cast %249 : vector<8xf32> to vector<8x1xf32>
    %251 = vector.broadcast %250 : vector<8x1xf32> to vector<8x8xf32>
    %252 = arith.subf %248, %251 : vector<8x8xf32>
    %253 = math.exp %252 : vector<8x8xf32>
    %cst_93 = arith.constant dense<0.000000e+00> : vector<8xf32>
    %254 = vector.multi_reduction <add>, %253, %cst_93 [1] : vector<8x8xf32> to vector<8xf32>
    %255 = vector.shape_cast %254 : vector<8xf32> to vector<8x1xf32>
    %256 = vector.broadcast %255 : vector<8x1xf32> to vector<8x8xf32>
    %257 = arith.divf %253, %256 : vector<8x8xf32>
    %258 = vector.extract_strided_slice %175 {offsets = [0, 32], sizes = [8, 8], strides = [1, 1]} : vector<8x64xf32> to vector<8x8xf32>
    %cst_94 = arith.constant dense<0.000000e+00> : vector<8x8xf32>
    %259 = tpu.matmul %257, %258, %cst_94 {dimension_numbers = #tpu.dot_dimension_numbers<[1], [0], [0], [1], [0, 0, 1, 1], [], []>} : vector<8x8xf32>, vector<8x8xf32>, vector<8x8xf32> -> vector<8x8xf32>
    %c8_95 = arith.constant 8 : index
    %c32_96 = arith.constant 32 : index
    %260 = vector.load %arg14[%c8_95, %c32_96] : memref<16x64xf32, #tpu.memory_space<vmem>>, vector<8x8xf32>
    tpu.vector_store %arg14[%c8_95, %c32_96], %259 {strides = array<i32>} : memref<16x64xf32, #tpu.memory_space<vmem>>, vector<8x8xf32>,
    %261 = vector.extract_strided_slice %174 {offsets = [0, 40], sizes = [8, 8], strides = [1, 1]} : vector<8x64xf32> to vector<8x8xf32>
    %262 = vector.extract_strided_slice %32 {offsets = [40, 8], sizes = [8, 8], strides = [1, 1]} : vector<64x16xf32> to vector<8x8xf32>
    %cst_97 = arith.constant dense<0.000000e+00> : vector<8x8xf32>
    %263 = tpu.matmul %261, %262, %cst_97 {dimension_numbers = #tpu.dot_dimension_numbers<[1], [0], [0], [1], [0, 0, 1, 1], [], []>} : vector<8x8xf32>, vector<8x8xf32>, vector<8x8xf32> -> vector<8x8xf32>
    %cst_98 = arith.constant -1.000000e+30 : f32
    %264 = vector.broadcast %cst_98 : f32 to vector<8x8xf32>
    %265 = arith.select %35, %263, %264 : vector<8x8xi1>, vector<8x8xf32>
    %cst_99 = arith.constant dense<0xFF800000> : vector<8xf32>
    %266 = vector.multi_reduction <maximumf>, %265, %cst_99 [1] : vector<8x8xf32> to vector<8xf32>
    %267 = vector.shape_cast %266 : vector<8xf32> to vector<8x1xf32>
    %268 = vector.broadcast %267 : vector<8x1xf32> to vector<8x8xf32>
    %269 = arith.subf %265, %268 : vector<8x8xf32>
    %270 = math.exp %269 : vector<8x8xf32>
    %cst_100 = arith.constant dense<0.000000e+00> : vector<8xf32>
    %271 = vector.multi_reduction <add>, %270, %cst_100 [1] : vector<8x8xf32> to vector<8xf32>
    %272 = vector.shape_cast %271 : vector<8xf32> to vector<8x1xf32>
    %273 = vector.broadcast %272 : vector<8x1xf32> to vector<8x8xf32>
    %274 = arith.divf %270, %273 : vector<8x8xf32>
    %275 = vector.extract_strided_slice %175 {offsets = [0, 40], sizes = [8, 8], strides = [1, 1]} : vector<8x64xf32> to vector<8x8xf32>
    %cst_101 = arith.constant dense<0.000000e+00> : vector<8x8xf32>
    %276 = tpu.matmul %274, %275, %cst_101 {dimension_numbers = #tpu.dot_dimension_numbers<[1], [0], [0], [1], [0, 0, 1, 1], [], []>} : vector<8x8xf32>, vector<8x8xf32>, vector<8x8xf32> -> vector<8x8xf32>
    %c8_102 = arith.constant 8 : index
    %c40_103 = arith.constant 40 : index
    %277 = vector.load %arg14[%c8_102, %c40_103] : memref<16x64xf32, #tpu.memory_space<vmem>>, vector<8x8xf32>
    tpu.vector_store %arg14[%c8_102, %c40_103], %276 {strides = array<i32>} : memref<16x64xf32, #tpu.memory_space<vmem>>, vector<8x8xf32>,
    %278 = vector.extract_strided_slice %174 {offsets = [0, 48], sizes = [8, 8], strides = [1, 1]} : vector<8x64xf32> to vector<8x8xf32>
    %279 = vector.extract_strided_slice %32 {offsets = [48, 8], sizes = [8, 8], strides = [1, 1]} : vector<64x16xf32> to vector<8x8xf32>
    %cst_104 = arith.constant dense<0.000000e+00> : vector<8x8xf32>
    %280 = tpu.matmul %278, %279, %cst_104 {dimension_numbers = #tpu.dot_dimension_numbers<[1], [0], [0], [1], [0, 0, 1, 1], [], []>} : vector<8x8xf32>, vector<8x8xf32>, vector<8x8xf32> -> vector<8x8xf32>
    %cst_105 = arith.constant -1.000000e+30 : f32
    %281 = vector.broadcast %cst_105 : f32 to vector<8x8xf32>
    %282 = arith.select %35, %280, %281 : vector<8x8xi1>, vector<8x8xf32>
    %cst_106 = arith.constant dense<0xFF800000> : vector<8xf32>
    %283 = vector.multi_reduction <maximumf>, %282, %cst_106 [1] : vector<8x8xf32> to vector<8xf32>
    %284 = vector.shape_cast %283 : vector<8xf32> to vector<8x1xf32>
    %285 = vector.broadcast %284 : vector<8x1xf32> to vector<8x8xf32>
    %286 = arith.subf %282, %285 : vector<8x8xf32>
    %287 = math.exp %286 : vector<8x8xf32>
    %cst_107 = arith.constant dense<0.000000e+00> : vector<8xf32>
    %288 = vector.multi_reduction <add>, %287, %cst_107 [1] : vector<8x8xf32> to vector<8xf32>
    %289 = vector.shape_cast %288 : vector<8xf32> to vector<8x1xf32>
    %290 = vector.broadcast %289 : vector<8x1xf32> to vector<8x8xf32>
    %291 = arith.divf %287, %290 : vector<8x8xf32>
    %292 = vector.extract_strided_slice %175 {offsets = [0, 48], sizes = [8, 8], strides = [1, 1]} : vector<8x64xf32> to vector<8x8xf32>
    %cst_108 = arith.constant dense<0.000000e+00> : vector<8x8xf32>
    %293 = tpu.matmul %291, %292, %cst_108 {dimension_numbers = #tpu.dot_dimension_numbers<[1], [0], [0], [1], [0, 0, 1, 1], [], []>} : vector<8x8xf32>, vector<8x8xf32>, vector<8x8xf32> -> vector<8x8xf32>
    %c8_109 = arith.constant 8 : index
    %c48_110 = arith.constant 48 : index
    %294 = vector.load %arg14[%c8_109, %c48_110] : memref<16x64xf32, #tpu.memory_space<vmem>>, vector<8x8xf32>
    tpu.vector_store %arg14[%c8_109, %c48_110], %293 {strides = array<i32>} : memref<16x64xf32, #tpu.memory_space<vmem>>, vector<8x8xf32>,
    %295 = vector.extract_strided_slice %174 {offsets = [0, 56], sizes = [8, 8], strides = [1, 1]} : vector<8x64xf32> to vector<8x8xf32>
    %296 = vector.extract_strided_slice %32 {offsets = [56, 8], sizes = [8, 8], strides = [1, 1]} : vector<64x16xf32> to vector<8x8xf32>
    %cst_111 = arith.constant dense<0.000000e+00> : vector<8x8xf32>
    %297 = tpu.matmul %295, %296, %cst_111 {dimension_numbers = #tpu.dot_dimension_numbers<[1], [0], [0], [1], [0, 0, 1, 1], [], []>} : vector<8x8xf32>, vector<8x8xf32>, vector<8x8xf32> -> vector<8x8xf32>
    %cst_112 = arith.constant -1.000000e+30 : f32
    %298 = vector.broadcast %cst_112 : f32 to vector<8x8xf32>
    %299 = arith.select %35, %297, %298 : vector<8x8xi1>, vector<8x8xf32>
    %cst_113 = arith.constant dense<0xFF800000> : vector<8xf32>
    %300 = vector.multi_reduction <maximumf>, %299, %cst_113 [1] : vector<8x8xf32> to vector<8xf32>
    %301 = vector.shape_cast %300 : vector<8xf32> to vector<8x1xf32>
    %302 = vector.broadcast %301 : vector<8x1xf32> to vector<8x8xf32>
    %303 = arith.subf %299, %302 : vector<8x8xf32>
    %304 = math.exp %303 : vector<8x8xf32>
    %cst_114 = arith.constant dense<0.000000e+00> : vector<8xf32>
    %305 = vector.multi_reduction <add>, %304, %cst_114 [1] : vector<8x8xf32> to vector<8xf32>
    %306 = vector.shape_cast %305 : vector<8xf32> to vector<8x1xf32>
    %307 = vector.broadcast %306 : vector<8x1xf32> to vector<8x8xf32>
    %308 = arith.divf %304, %307 : vector<8x8xf32>
    %309 = vector.extract_strided_slice %175 {offsets = [0, 56], sizes = [8, 8], strides = [1, 1]} : vector<8x64xf32> to vector<8x8xf32>
    %cst_115 = arith.constant dense<0.000000e+00> : vector<8x8xf32>
    %310 = tpu.matmul %308, %309, %cst_115 {dimension_numbers = #tpu.dot_dimension_numbers<[1], [0], [0], [1], [0, 0, 1, 1], [], []>} : vector<8x8xf32>, vector<8x8xf32>, vector<8x8xf32> -> vector<8x8xf32>
    %c8_116 = arith.constant 8 : index
    %c56_117 = arith.constant 56 : index
    %311 = vector.load %arg14[%c8_116, %c56_117] : memref<16x64xf32, #tpu.memory_space<vmem>>, vector<8x8xf32>
    tpu.vector_store %arg14[%c8_116, %c56_117], %310 {strides = array<i32>} : memref<16x64xf32, #tpu.memory_space<vmem>>, vector<8x8xf32>,
    %c0_118 = arith.constant 0 : index
    %c0_119 = arith.constant 0 : index
    %312 = vector.load %arg14[%c0_118, %c0_119] : memref<16x64xf32, #tpu.memory_space<vmem>>, vector<16x64xf32>
    %c0_120 = arith.constant 0 : index
    %c0_121 = arith.constant 0 : index
    %313 = vector.load %arg3[%c0_120, %c0_121] : memref<64x64xf32, #tpu.memory_space<vmem>>, vector<64x64xf32>
    %cst_122 = arith.constant dense<0.000000e+00> : vector<16x64xf32>
    %314 = tpu.matmul %312, %313, %cst_122 {dimension_numbers = #tpu.dot_dimension_numbers<[1], [0], [0], [1], [0, 0, 1, 1], [], []>} : vector<16x64xf32>, vector<64x64xf32>, vector<16x64xf32> -> vector<16x64xf32>
    %315 = arith.addf %0, %314 : vector<16x64xf32>
    %c0_123 = arith.constant 0 : index
    %c0_124 = arith.constant 0 : index
    %316 = vector.load %arg4[%c0_123, %c0_124] : memref<1x64xf32, #tpu.memory_space<vmem>>, vector<1x64xf32>
    %317 = vector.broadcast %316 : vector<1x64xf32> to vector<16x64xf32>
    %318 = arith.addf %315, %317 : vector<16x64xf32>
    %c0_125 = arith.constant 0 : index
    %c0_126 = arith.constant 0 : index
    %319 = vector.load %arg7[%c0_125, %c0_126] : memref<1x64xf32, #tpu.memory_space<vmem>>, vector<1x64xf32>
    %c0_127 = arith.constant 0 : index
    %c0_128 = arith.constant 0 : index
    %320 = vector.load %arg8[%c0_127, %c0_128] : memref<1x64xf32, #tpu.memory_space<vmem>>, vector<1x64xf32>
    %cst_129 = arith.constant dense<0.000000e+00> : vector<16xf32>
    %321 = vector.multi_reduction <add>, %318, %cst_129 [1] : vector<16x64xf32> to vector<16xf32>
    %322 = vector.shape_cast %321 : vector<16xf32> to vector<16x1xf32>
    %cst_130 = arith.constant 6.400000e+01 : f32
    %323 = vector.broadcast %cst_130 : f32 to vector<16x1xf32>
    %324 = arith.divf %322, %323 : vector<16x1xf32>
    %325 = vector.broadcast %324 : vector<16x1xf32> to vector<16x64xf32>
    %326 = arith.subf %318, %325 : vector<16x64xf32>
    %327 = arith.mulf %326, %326 : vector<16x64xf32>
    %cst_131 = arith.constant dense<0.000000e+00> : vector<16xf32>
    %328 = vector.multi_reduction <add>, %327, %cst_131 [1] : vector<16x64xf32> to vector<16xf32>
    %329 = vector.shape_cast %328 : vector<16xf32> to vector<16x1xf32>
    %cst_132 = arith.constant 6.400000e+01 : f32
    %330 = vector.broadcast %cst_132 : f32 to vector<16x1xf32>
    %331 = arith.divf %329, %330 : vector<16x1xf32>
    %332 = vector.broadcast %324 : vector<16x1xf32> to vector<16x64xf32>
    %333 = arith.subf %318, %332 : vector<16x64xf32>
    %cst_133 = arith.constant 9.99999974E-6 : f32
    %334 = vector.broadcast %cst_133 : f32 to vector<16x1xf32>
    %335 = arith.addf %331, %334 : vector<16x1xf32>
    %336 = math.rsqrt %335 : vector<16x1xf32>
    %337 = vector.broadcast %336 : vector<16x1xf32> to vector<16x64xf32>
    %338 = arith.mulf %333, %337 : vector<16x64xf32>
    %339 = vector.broadcast %319 : vector<1x64xf32> to vector<16x64xf32>
    %340 = arith.mulf %338, %339 : vector<16x64xf32>
    %341 = vector.broadcast %320 : vector<1x64xf32> to vector<16x64xf32>
    %342 = arith.addf %340, %341 : vector<16x64xf32>
    %c0_134 = arith.constant 0 : index
    %c0_135 = arith.constant 0 : index
    %343 = vector.load %arg9[%c0_134, %c0_135] : memref<64x256xf32, #tpu.memory_space<vmem>>, vector<64x256xf32>
    %cst_136 = arith.constant dense<0.000000e+00> : vector<16x256xf32>
    %344 = tpu.matmul %342, %343, %cst_136 {dimension_numbers = #tpu.dot_dimension_numbers<[1], [0], [0], [1], [0, 0, 1, 1], [], []>} : vector<16x64xf32>, vector<64x256xf32>, vector<16x256xf32> -> vector<16x256xf32>
    %c0_137 = arith.constant 0 : index
    %c0_138 = arith.constant 0 : index
    %345 = vector.load %arg10[%c0_137, %c0_138] : memref<1x256xf32, #tpu.memory_space<vmem>>, vector<1x256xf32>
    %346 = vector.broadcast %345 : vector<1x256xf32> to vector<16x256xf32>
    %347 = arith.addf %344, %346 : vector<16x256xf32>
    %cst_139 = arith.constant 0.000000e+00 : f32
    %348 = vector.broadcast %cst_139 : f32 to vector<16x256xf32>
    %349 = arith.maximumf %347, %348 : vector<16x256xf32>
    %c0_140 = arith.constant 0 : index
    %c0_141 = arith.constant 0 : index
    %350 = vector.load %arg11[%c0_140, %c0_141] : memref<256x64xf32, #tpu.memory_space<vmem>>, vector<256x64xf32>
    %cst_142 = arith.constant dense<0.000000e+00> : vector<16x64xf32>
    %351 = tpu.matmul %349, %350, %cst_142 {dimension_numbers = #tpu.dot_dimension_numbers<[1], [0], [0], [1], [0, 0, 1, 1], [], []>} : vector<16x256xf32>, vector<256x64xf32>, vector<16x64xf32> -> vector<16x64xf32>
    %c0_143 = arith.constant 0 : index
    %c0_144 = arith.constant 0 : index
    %352 = vector.load %arg12[%c0_143, %c0_144] : memref<1x64xf32, #tpu.memory_space<vmem>>, vector<1x64xf32>
    %353 = vector.broadcast %352 : vector<1x64xf32> to vector<16x64xf32>
    %354 = arith.addf %351, %353 : vector<16x64xf32>
    %355 = arith.addf %318, %354 : vector<16x64xf32>
    %c0_145 = arith.constant 0 : index
    %c0_146 = arith.constant 0 : index
    %356 = vector.load %arg13[%c0_145, %c0_146] : memref<16x64xf32, #tpu.memory_space<vmem>>, vector<16x64xf32>
    tpu.vector_store %arg13[%c0_145, %c0_146], %355 {strides = array<i32>} : memref<16x64xf32, #tpu.memory_space<vmem>>, vector<16x64xf32>,
    return
  }
  func.func @transform_0(%arg0: i32) -> (i32, i32) {
    %c0_i32 = arith.constant 0 : i32
    %c0_i32_0 = arith.constant 0 : i32
    return %arg0, %c0_i32 : i32, i32
  }
  func.func @transform_1(%arg0: i32) -> (i32, i32) {
    %c0_i32 = arith.constant 0 : i32
    %c0_i32_0 = arith.constant 0 : i32
    %c0_i32_1 = arith.constant 0 : i32
    return %c0_i32, %c0_i32_0 : i32, i32
  }
  func.func @transform_2(%arg0: i32) -> (i32, i32) {
    %c0_i32 = arith.constant 0 : i32
    %c0_i32_0 = arith.constant 0 : i32
    %c0_i32_1 = arith.constant 0 : i32
    return %c0_i32, %c0_i32_0 : i32, i32
  }
  func.func @transform_3(%arg0: i32) -> (i32, i32) {
    %c0_i32 = arith.constant 0 : i32
    %c0_i32_0 = arith.constant 0 : i32
    %c0_i32_1 = arith.constant 0 : i32
    return %c0_i32, %c0_i32_0 : i32, i32
  }
  func.func @transform_4(%arg0: i32) -> (i32, i32) {
    %c0_i32 = arith.constant 0 : i32
    %c0_i32_0 = arith.constant 0 : i32
    %c0_i32_1 = arith.constant 0 : i32
    return %c0_i32, %c0_i32_0 : i32, i32
  }
  func.func @transform_5(%arg0: i32) -> (i32, i32) {
    %c0_i32 = arith.constant 0 : i32
    %c0_i32_0 = arith.constant 0 : i32
    %c0_i32_1 = arith.constant 0 : i32
    return %c0_i32, %c0_i32_0 : i32, i32
  }
  func.func @transform_6(%arg0: i32) -> (i32, i32) {
    %c0_i32 = arith.constant 0 : i32
    %c0_i32_0 = arith.constant 0 : i32
    %c0_i32_1 = arith.constant 0 : i32
    return %c0_i32, %c0_i32_0 : i32, i32
  }
  func.func @transform_7(%arg0: i32) -> (i32, i32) {
    %c0_i32 = arith.constant 0 : i32
    %c0_i32_0 = arith.constant 0 : i32
    %c0_i32_1 = arith.constant 0 : i32
    return %c0_i32, %c0_i32_0 : i32, i32
  }
  func.func @transform_8(%arg0: i32) -> (i32, i32) {
    %c0_i32 = arith.constant 0 : i32
    %c0_i32_0 = arith.constant 0 : i32
    %c0_i32_1 = arith.constant 0 : i32
    return %c0_i32, %c0_i32_0 : i32, i32
  }
  func.func @transform_9(%arg0: i32) -> (i32, i32) {
    %c0_i32 = arith.constant 0 : i32
    %c0_i32_0 = arith.constant 0 : i32
    %c0_i32_1 = arith.constant 0 : i32
    return %c0_i32, %c0_i32_0 : i32, i32
  }
  func.func @transform_10(%arg0: i32) -> (i32, i32) {
    %c0_i32 = arith.constant 0 : i32
    %c0_i32_0 = arith.constant 0 : i32
    %c0_i32_1 = arith.constant 0 : i32
    return %c0_i32, %c0_i32_0 : i32, i32
  }
  func.func @transform_11(%arg0: i32) -> (i32, i32) {
    %c0_i32 = arith.constant 0 : i32
    %c0_i32_0 = arith.constant 0 : i32
    %c0_i32_1 = arith.constant 0 : i32
    return %c0_i32, %c0_i32_0 : i32, i32
  }
  func.func @transform_12(%arg0: i32) -> (i32, i32) {
    %c0_i32 = arith.constant 0 : i32
    %c0_i32_0 = arith.constant 0 : i32
    return %arg0, %c0_i32 : i32, i32
  }
}

</mosaic_0001>

<bundles_post_ra>
// kernel: tpu_custom_call.1
= control target key start
LH: loop header
LB: loop body
LE: loop exit
PB: predicated region body
PF: predicated region fallthrough
CT: control target
= control target key end

     0   :  { %17 = vsyncpa [#allocation4], 0  ;;  %s4786_s0 = inlined_call_operand.hbm [shape: f32[16,64], index: 0, kind: input, shape index: {}, may-alias: {0,12}]   ;;  %s4787_s1 = inlined_call_operand.vmem [shape: f32[64,192], index: 1, kind: input, shape index: {}]   ;;  %s4788_s2 = inlined_call_operand.vmem [shape: f32[64,64], index: 2, kind: input, shape index: {}]   ;;  %s4789_s3 = inlined_call_operand.vmem [shape: f32[1,64], index: 3, kind: input, shape index: {}]   ;;  %s4790_s4 = inlined_call_operand.vmem [shape: f32[1,64], index: 4, kind: input, shape index: {}]   ;;  %s4791_s5 = inlined_call_operand.vmem [shape: f32[1,64], index: 5, kind: input, shape index: {}]   ;;  %s4792_s6 = inlined_call_operand.vmem [shape: f32[1,64], index: 6, kind: input, shape index: {}]   ;;  %s4793_s7 = inlined_call_operand.vmem [shape: f32[1,64], index: 7, kind: input, shape index: {}]   ;;  %s4794_s8 = inlined_call_operand.vmem [shape: f32[64,256], index: 8, kind: input, shape index: {}]   ;;  %s4795_s9 = inlined_call_operand.vmem [shape: f32[1,256], index: 9, kind: input, shape index: {}]   ;;  %s4796_s10 = inlined_call_operand.vmem [shape: f32[256,64], index: 10, kind: input, shape index: {}]   ;;  %s4797_s11 = inlined_call_operand.vmem [shape: f32[1,64], index: 11, kind: input, shape index: {}]   ;;  %s4798_s12 = inlined_call_operand.hbm [shape: f32[16,64], index: 12, kind: output, shape index: {}, may-alias: {0,12}]  }
   0x1   :  { %18 = vsyncpa [#allocation5], 0  ;;  %s3911_s21 = smov [#allocation3]   ;;  %s3863_s25 = scalar_lea.hbm %s4786_s0, 256 }
   0x2   :  { %s24_s22 = sshll.u32 %s3911_s21, 4  ;;  %p3864_p0 = scmp.ne.s32.totalorder %s4786_s0, %s3863_s25  ;;  %s25_s22 = int_to_ptr.vmem [resolvable:$true] %s24_s22 }
   0x3   :  { %p3867_p1 = scmp.lt.u32.totalorder %s3863_s25, %s4786_s0 }
   0x5   :  { %p3869_p2 = pnand %p3867_p1, %p3864_p0 }
   0x7   :  { %3872 = shalt.err (!%p3869_p2)
}
   0x8   :  { %s3873_s30 = scalar_lea.vmem %s25_s22, 256  ;;  %p3878_p4 = scmp.lt.s32.totalorder %s25_s22, %s25_s22 }
   0x9   :  { %p3874_p3 = scmp.ne.s32.totalorder %s25_s22, %s3873_s30  ;;  %p3879_p5 = scmp.lt.s32.totalorder %s3873_s30, %s3873_s30 }
   0xb   :  { %p3880_p6 = por %p3879_p5, %p3878_p4 }
   0xd   :  { %p3881_p7 = pnand %p3880_p6, %p3874_p3 }
   0xf   :  { %3884 = shalt.err (!%p3881_p7)
}
  0x10   :  { %s3912_s13 = smov 128   ;;  %s3913_s14 = smov 8  }
  0x11   :  { %30 = dma.hbm_to_vmem [thread:$0]  %s4786_s0, 256, %s25_s22, [#allocation4], %s3912_s13, %s3912_s13, %s3913_s14  }
  0x12   :  { %3907 = dma.done.wait [#allocation4], 256  }
  0x13   :  { %3908 = vsyncadd [#allocation4], 4294967040  ;;  %vm60_vm0 = vcmask 523264   ;;  %v56_v0 = vld [vmem:[#allocation3] sm:$0xff]  ;;  %v105_v7 = vld [vmem:[%s4787_s1 + $0x8] sm:$0xff]  ;;  %v3914_v20 = vmov 0.0   ;;  %v205_v45 = vlaneseq }
  0x14   :  { %v61_v1 = vsel %vm60_vm0, %v56_v0, 0.0  ;;  %v107_v8 = vld [vmem:[%s4787_s1 + $0x18] sm:$0xff]  ;;  %v104_v10 = vld [vmem:[%s4787_s1] sm:$0xff]  ;;  %v106_v11 = vld [vmem:[%s4787_s1 + $0x10] sm:$0xff]  ;;  %190 = vmatprep.mubr.f32.mxu0 %v3914_v20  ;;  %3510 = vmatprep.subr.mxu1 %v3914_v20  ;;  %vm3915_vm1 = vmmov 0   ;;  %vm213_vm2 = vcmask 64512  }
  0x15   :  { %62 = vadd.xlane.f32.xlu0 %v61_v1  ;;  %v3689_v9 = vpack.c.bf16 %v107_v8, %v105_v7  ;;  %v3691_v12 = vpack.c.bf16 %v106_v11, %v104_v10  ;;  %v109_v13 = vld [vmem:[%s4787_s1 + $0x28] sm:$0xff]  ;;  %v111_v14 = vld [vmem:[%s4787_s1 + $0x38] sm:$0xff]  ;;  %v108_v15 = vld [vmem:[%s4787_s1 + $0x20] sm:$0xff]  ;;  %3512 = vmatprep.mubr.msk.f32.mxu1 %vm3915_vm1, %v3914_v20  ;;  %v4099_v46 = vshrl.u32 %v205_v45, 7  ;;  %v208_v47 = vand.u32 127, %v205_v45  ;;  %s3919_s19 = smov 48  }
  0x16   :  { %v3693_v16 = vpack.c.bf16 %v111_v14, %v109_v13  ;;  %v110_v17 = vld [vmem:[%s4787_s1 + $0x30] sm:$0xff]  ;;  %v113_v18 = vld [vmem:[%s4787_s1 + $0x48] sm:$0xff]  ;;  %v115_v19 = vld [vmem:[%s4787_s1 + $0x58] sm:$0xff]  ;;  %s3920_s0 = smov 88   ;;  %s3921_s20 = smov 80   ;;  %vm546_vm4 = vcmask 130112  }
  0x17   :  { %3690 = vmatprep.subr.bf16.mxu0 %v3689_v9  ;;  %v3695_v21 = vpack.c.bf16 %v110_v17, %v108_v15  ;;  %v3697_v22 = vpack.c.bf16 %v115_v19, %v113_v18  ;;  %v112_v23 = vld [vmem:[%s4787_s1 + $0x40] sm:$0xff]  ;;  %v114_v24 = vld [vmem:[%s4787_s1 + $0x50] sm:$0xff]  ;;  %v117_v25 = vld [vmem:[%s4787_s1 + $0x68] sm:$0xff]  ;;  %vm4102_vm3 = vcmp.le.s32.totalorder %v208_v47, %v4099_v46  ;;  %s3922_s21 = smov 72   ;;  %s3923_s22 = smov 112   ;;  %vm718_vm5 = vcmask 195712  }
  0x18   :  { %3692 = vmatpush1.bf16.msra.mxu0 %v3691_v12  ;;  %v119_v26 = vld [vmem:[%s4787_s1 + $0x78] sm:$0xff]  ;;  %v3699_v27 = vpack.c.bf16 %v114_v24, %v112_v23  ;;  %v116_v29 = vld [vmem:[%s4787_s1 + $0x60] sm:$0xff]  ;;  %v118_v30 = vld [vmem:[%s4787_s1 + $0x70] sm:$0xff]  ;;  %s3916_s1 = smov 56   ;;  %s3924_s23 = smov 40   ;;  %vm890_vm6 = vcmask 261312  }
  0x19   :  { %3694 = vmatprep.subr.bf16.mxu0 %v3693_v16  ;;  %v3701_v28 = vpack.c.bf16 %v119_v26, %v117_v25  ;;  %v3703_v31 = vpack.c.bf16 %v118_v30, %v116_v29  ;;  %v4067_v36 = vld [vmem:[%s4790_s4] ss:$0 sm:$0xff]  ;;  %s3917_s4 = smov 64   ;;  %v57_v58 = vld [vmem:[#allocation3 + $0x8] sm:$0xff]  ;;  %s3925_s24 = smov 104   ;;  %vm1062_vm7 = vcmask 326912  }
  0x1a   :  { %v4072_v38 = vld [vmem:[%s4791_s5] ss:$0 sm:$0xff]  ;;  %s3918_s5 = smov 120   ;;  %v64_v59 = vsel %vm60_vm0, %v57_v58, 0.0  ;;  %s3926_s25 = smov 32   ;;  %vm1234_vm8 = vcmask 392512  }
  0x1b   :  { %s3927_s26 = smov 96   ;;  %s3928_s27 = smov 24   ;;  %vm1406_vm9 = vcmask 458112   ;;  %vm1578_vm10 = vcmask 523712  }
  0x1c   :  { %3696 = vmatpush1.bf16.msra.mxu0 %v3695_v21  ;;  %s3929_s28 = smov 16   ;;  %s3930_s18 = smov [#allocation6]  }
  0x1d   :  { %3698 = vmatprep.subr.bf16.mxu0 %v3697_v22 }
  0x20   :  { %3700 = vmatpush1.bf16.msra.mxu0 %v3699_v27 }
  0x21   :  { %3702 = vmatprep.subr.bf16.mxu0 %v3701_v28 }
  0x24   :  { %3704 = vmatpush1.bf16.msra.mxu0 %v3703_v31 }
  0x25   :  { %3535 = vmatprep.subr.mxu0 %v3914_v20 }
  0xa2   :  { %v63_v2 = vpop.xlane.xlu0 %62 }
  0xa3   :  { %v68_v3 = vmul.f32 0.015625, %v63_v2 }
  0xa5   :  { %v70_v4 = vsub.f32 %v56_v0, %v68_v3 }
  0xa7   :  { %v72_v5 = vmul.f32 %v70_v4, %v70_v4 }
  0xa9   :  { %v74_v6 = vsel %vm60_vm0, %v72_v5, 0.0 }
  0xaa   :  { %75 = vadd.xlane.f32.xlu0 %v74_v6 }
 0x137   :  { %v76_v32 = vpop.xlane.xlu0 %75 }
 0x138   :  { %v80_v33 = vmul.f32 0.015625, %v76_v32 }
 0x13a   :  { %v82_v34 = vadd.f32 1e-05, %v80_v33 }
 0x13c   :  { %3789 = vrsqrt.f32 %v82_v34 }
 0x146   :  { %v3790_v35 = vpop.eup %3789 }
 0x147   :  { %v86_v37 = vmul.f32 %v3790_v35, %v70_v4 }
 0x149   :  { %v94_v39 = vmul.f32 %v4067_v36, %v86_v37 }
 0x14b   :  { %v102_v40 = vadd.f32 %v4072_v38, %v94_v39 }
 0x14d   :  { %3340 = vmatmul.mubr.msk.f32.vlgmr.msra.gmra.mrb[0].mxu0 %vm60_vm0, %v102_v40 }
 0x14e   :  { %196 = vmatprep.mubr.f32.mxu0 %v3914_v20 }
 0x220   :  { %v4080_v41 = vpop.f32.mrb[0].mxu0 }
 0x221   :  { %377 = vrot.lane.b32.xlu0 %v4080_v41, %s3916_s1  ;;  %211 = vrot.lane.b32.xlu1 %v4080_v41, %s3917_s4  ;;  %v4086_v42 = vpop.f32.mrb[1].mxu0  ;;  %v4090_v44 = vmul.f32 0.125, %v4080_v41 }
 0x293   :  { %v212_v43 = vpop.permute.xlu1 %211  ;;  %v378_v60 = vpop.permute.xlu0 %377 }
 0x294   :  { %3511 = vmatpush3.xpose.msk.msra.mxu1 %vm213_vm2, %v212_v43 }
 0x295   :  { %3515 = vmatprep.subr.mxu1 %v3914_v20 }
 0x297   :  { %3513 = vmatmul.mubr.msk.f32.vlgmr.msra.gmra.mrb[0].mxu1 %vm213_vm2, %v4090_v44 }
 0x298   :  { %3516 = vmatpush3.msra.mxu1 %v4086_v42  ;;  %3517 = vmatprep.mubr.msk.f32.mxu1 %vm3915_vm1, %v3914_v20 }
 0x299   :  { %3520 = vmatprep.subr.mxu1 %v3914_v20 }
 0x36a   :  { %v285_v49 = vpop.f32.mrb[0].mxu1 }
 0x36b   :  { %v289_v50 = vsel %vm4102_vm3, %v285_v49, -1e+30  ;;  %v3514_v51 = vpop.f32.mrb[1].mxu1 }
 0x36c   :  { %v290_v52 = vsel %vm213_vm2, %v289_v50, -inf }
 0x36d   :  { %291 = vmax.xlane.f32.xlu1 %v290_v52 }
 0x3fa   :  { %v292_v53 = vpop.xlane.xlu1 %291 }
 0x3fb   :  { %v293_v54 = vsub.f32 %v289_v50, %v292_v53 }
 0x3fd   :  { %v294_v55 = vmul.f32 1.442695, %v293_v54 }
 0x3ff   :  { %3791 = vpow2.f32 %v294_v55 }
 0x409   :  { %v3792_v56 = vpop.eup %3791 }
 0x40a   :  { %v296_v57 = vsel %vm213_vm2, %v3792_v56, 0.0 }
 0x40b   :  { %297 = vadd.xlane.f32.xlu0 %v296_v57 }
 0x421   :  { %375 = vrot.lane.b32.xlu0 %v4090_v44, %s3918_s5 }
 0x440   :  { %65 = vadd.xlane.f32.xlu0 %v64_v59 }
 0x456   :  { %550 = vrot.lane.b32.xlu0 %v4080_v41, %s3919_s19 }
 0x45a   :  { %1064 = vrot.lane.b32.xlu0 %v4090_v44, %s3920_s0 }
 0x45e   :  { %1236 = vrot.lane.b32.xlu0 %v4090_v44, %s3921_s20 }
 0x462   :  { %1408 = vrot.lane.b32.xlu0 %v4090_v44, %s3922_s21 }
 0x498   :  { %v298_v61 = vpop.xlane.xlu0 %297 }
 0x499   :  { %3793 = vrcp.f32 %v298_v61 }
 0x49c   :  { %v376_v0 = vpop.permute.xlu0 %375 }
 0x4a3   :  { %v3794_v62 = vpop.eup %3793 }
 0x4a4   :  { %v300_v63 = vmul.f32 %v3794_v62, %v3792_v56 }
 0x4a6   :  { %3518 = vmatmul.mubr.msk.f32.vlgmr.msra.gmra.mrb[2].mxu1 %vm213_vm2, %v300_v63 }
 0x4a7   :  { %3521 = vmatpush3.xpose.msk.msra.mxu1 %vm213_vm2, %v378_v60  ;;  %3522 = vmatprep.mubr.msk.f32.mxu1 %vm3915_vm1, %v3914_v20 }
 0x4a8   :  { %3525 = vmatprep.subr.mxu1 %v3914_v20 }
 0x4aa   :  { %3523 = vmatmul.mubr.msk.f32.vlgmr.msra.gmra.mrb[4].mxu1 %vm213_vm2, %v376_v0 }
 0x4ab   :  { %3527 = vmatprep.mubr.msk.f32.mxu1 %vm3915_vm1, %v3914_v20 }
 0x4cd   :  { %v66_v1 = vpop.xlane.xlu0 %65 }
 0x4ce   :  { %v69_v2 = vmul.f32 0.015625, %v66_v1 }
 0x4d0   :  { %v71_v3 = vsub.f32 %v57_v58, %v69_v2 }
 0x4d1   :  { %v551_v33 = vpop.permute.xlu0 %550 }
 0x4d2   :  { %v73_v4 = vmul.f32 %v71_v3, %v71_v3 }
 0x4d4   :  { %v77_v5 = vsel %vm60_vm0, %v73_v4, 0.0 }
 0x4d5   :  { %78 = vadd.xlane.f32.xlu1 %v77_v5  ;;  %v1065_v35 = vpop.permute.xlu0 %1064 }
 0x4d9   :  { %v1237_v37 = vpop.permute.xlu0 %1236 }
 0x562   :  { %v79_v6 = vpop.xlane.xlu1 %78 }
 0x563   :  { %v81_v7 = vmul.f32 0.015625, %v79_v6 }
 0x565   :  { %v83_v8 = vadd.f32 1e-05, %v81_v7 }
 0x567   :  { %3795 = vrsqrt.f32 %v83_v8 }
 0x571   :  { %v3796_v9 = vpop.eup %3795 }
 0x572   :  { %v87_v10 = vmul.f32 %v3796_v9, %v71_v3 }
 0x574   :  { %v95_v11 = vmul.f32 %v4067_v36, %v87_v10 }
 0x576   :  { %v103_v12 = vadd.f32 %v4072_v38, %v95_v11 }
 0x578   :  { %3341 = vmatmul.mubr.msk.f32.gmra.mrb[2].mxu0 %vm60_vm0, %v103_v12 }
 0x579   :  { %v370_v13 = vpop.f32.mrb[2].mxu1  ;;  %3537 = vmatprep.mubr.msk.f32.mxu0 %vm3915_vm1, %v3914_v20 }
 0x57a   :  { %374 = vst.msk [vmem:[#allocation2] sm:$0xff] %vm213_vm2, %v370_v13  ;;  %v3519_v14 = vpop.f32.mrb[3].mxu1 }
 0x57d   :  { %v449_v15 = vpop.f32.mrb[4].mxu1 }
 0x57e   :  { %v453_v16 = vsel %vm4102_vm3, %v449_v15, -1e+30  ;;  %v3524_v17 = vpop.f32.mrb[5].mxu1 }
 0x57f   :  { %v454_v18 = vsel %vm213_vm2, %v453_v16, -inf }
 0x580   :  { %455 = vmax.xlane.f32.xlu1 %v454_v18 }
 0x591   :  { %466 = vrot.lane.b32.xlu1 %v4086_v42, %s3918_s5 }
 0x595   :  { %548 = vrot.lane.b32.xlu1 %v4090_v44, %s3923_s22 }
 0x599   :  { %722 = vrot.lane.b32.xlu1 %v4080_v41, %s3924_s23 }
 0x59d   :  { %720 = vrot.lane.b32.xlu1 %v4090_v44, %s3925_s24 }
 0x5a1   :  { %894 = vrot.lane.b32.xlu1 %v4080_v41, %s3926_s25 }
 0x60d   :  { %v456_v19 = vpop.xlane.xlu1 %455 }
 0x60e   :  { %v457_v21 = vsub.f32 %v453_v16, %v456_v19 }
 0x610   :  { %v458_v22 = vmul.f32 1.442695, %v457_v21 }
 0x611   :  { %v467_v23 = vpop.permute.xlu1 %466 }
 0x612   :  { %3797 = vpow2.f32 %v458_v22  ;;  %3526 = vmatpush3.msra.mxu1 %v467_v23 }
 0x613   :  { %3530 = vmatprep.subr.mxu1 %v3914_v20 }
 0x615   :  { %v549_v29 = vpop.permute.xlu1 %548 }
 0x619   :  { %v723_v30 = vpop.permute.xlu1 %722 }
 0x61c   :  { %v3798_v24 = vpop.eup %3797 }
 0x61d   :  { %v460_v25 = vsel %vm213_vm2, %v3798_v24, 0.0  ;;  %v721_v31 = vpop.permute.xlu1 %720 }
 0x61e   :  { %461 = vadd.xlane.f32.xlu1 %v460_v25 }
 0x621   :  { %v895_v32 = vpop.permute.xlu1 %894 }
 0x62f   :  { %892 = vrot.lane.b32.xlu1 %v4090_v44, %s3927_s26 }
 0x633   :  { %1066 = vrot.lane.b32.xlu1 %v4080_v41, %s3928_s27 }
 0x637   :  { %1238 = vrot.lane.b32.xlu1 %v4080_v41, %s3929_s28 }
 0x63b   :  { %1410 = vrot.lane.b32.xlu1 %v4080_v41, %s3913_s14  ;;  %v1409_v41 = vpop.permute.xlu0 %1408 }
 0x64b   :  { %v198_v26 = vpop.f32.mrb[2].mxu0 }
 0x64c   :  { %1746 = vrot.lane.b32.xlu0 %v198_v26, %s3916_s1  ;;  %1581 = vrot.lane.b32.xlu1 %v198_v26, %s3917_s4  ;;  %v4161_v27 = vpop.f32.mrb[3].mxu0  ;;  %v4163_v28 = vmul.f32 0.125, %v198_v26  ;;  %s3326_s4 = sshll.u32 %s3930_s18, 4  ;;  %s3327_s4 = int_to_ptr.vmem [resolvable:$true] %s3326_s4 }
 0x64d   :  { %p3890_p9 = scmp.lt.s32.totalorder %s3327_s4, %s3327_s4 }
 0x650   :  { %1918 = vrot.lane.b32.xlu0 %v198_v26, %s3919_s19  ;;  %1744 = vrot.lane.b32.xlu1 %v4163_v28, %s3918_s5 }
 0x654   :  { %2089 = vrot.lane.b32.xlu0 %v198_v26, %s3924_s23  ;;  %1916 = vrot.lane.b32.xlu1 %v4163_v28, %s3923_s22 }
 0x658   :  { %2260 = vrot.lane.b32.xlu0 %v198_v26, %s3926_s25  ;;  %2087 = vrot.lane.b32.xlu1 %v4163_v28, %s3925_s24 }
 0x65c   :  { %2431 = vrot.lane.b32.xlu0 %v198_v26, %s3928_s27  ;;  %2258 = vrot.lane.b32.xlu1 %v4163_v28, %s3927_s26 }
 0x660   :  { %2602 = vrot.lane.b32.xlu0 %v198_v26, %s3929_s28  ;;  %2429 = vrot.lane.b32.xlu1 %v4163_v28, %s3920_s0 }
 0x664   :  { %2773 = vrot.lane.b32.xlu0 %v198_v26, %s3913_s14  ;;  %2600 = vrot.lane.b32.xlu1 %v4163_v28, %s3921_s20 }
 0x668   :  { %638 = vrot.lane.b32.xlu0 %v4086_v42, %s3923_s22  ;;  %2771 = vrot.lane.b32.xlu1 %v4163_v28, %s3922_s21 }
 0x66c   :  { %1154 = vrot.lane.b32.xlu0 %v4086_v42, %s3920_s0  ;;  %810 = vrot.lane.b32.xlu1 %v4086_v42, %s3925_s24 }
 0x670   :  { %982 = vrot.lane.b32.xlu1 %v4086_v42, %s3927_s26 }
 0x674   :  { %1326 = vrot.lane.b32.xlu1 %v4086_v42, %s3921_s20 }
 0x6ab   :  { %v462_v34 = vpop.xlane.xlu1 %461 }
 0x6ac   :  { %3799 = vrcp.f32 %v462_v34 }
 0x6af   :  { %v893_v36 = vpop.permute.xlu1 %892 }
 0x6b3   :  { %v1067_v38 = vpop.permute.xlu1 %1066 }
 0x6b6   :  { %v3800_v39 = vpop.eup %3799 }
 0x6b7   :  { %v464_v40 = vmul.f32 %v3800_v39, %v3798_v24  ;;  %v1239_v43 = vpop.permute.xlu1 %1238 }
 0x6b9   :  { %3528 = vmatmul.mubr.msk.f32.vlgmr.msra.gmra.mrb[6].mxu1 %vm213_vm2, %v464_v40 }
 0x6ba   :  { %3531 = vmatpush3.xpose.msk.msra.mxu1 %vm213_vm2, %v551_v33  ;;  %3532 = vmatprep.mubr.msk.f32.mxu1 %vm3915_vm1, %v3914_v20 }
 0x6bb   :  { %3540 = vmatprep.subr.mxu1 %v3914_v20  ;;  %v1411_v45 = vpop.permute.xlu1 %1410 }
 0x6bd   :  { %3533 = vmatmul.mubr.msk.f32.vlgmr.msra.gmra.mrb[8].mxu1 %vm213_vm2, %v549_v29 }
 0x6be   :  { %3541 = vmatpush3.xpose.msk.msra.mxu1 %vm213_vm2, %v723_v30  ;;  %v1747_v44 = vpop.permute.xlu0 %1746  ;;  %3542 = vmatprep.mubr.msk.f32.mxu1 %vm3915_vm1, %v3914_v20 }
 0x6bf   :  { %3550 = vmatprep.subr.mxu1 %v3914_v20  ;;  %v1582_v49 = vpop.permute.xlu1 %1581 }
 0x6c1   :  { %3543 = vmatmul.mubr.msk.f32.vlgmr.msra.gmra.mrb[10].mxu1 %vm213_vm2, %v721_v31 }
 0x6c2   :  { %3551 = vmatpush3.xpose.msk.msra.mxu1 %vm213_vm2, %v895_v32  ;;  %v1919_v47 = vpop.permute.xlu0 %1918  ;;  %3552 = vmatprep.mubr.msk.f32.mxu1 %vm3915_vm1, %v3914_v20 }
 0x6c3   :  { %3560 = vmatprep.subr.mxu1 %v3914_v20  ;;  %v1745_v52 = vpop.permute.xlu1 %1744 }
 0x6c5   :  { %3553 = vmatmul.mubr.msk.f32.vlgmr.msra.gmra.mrb[12].mxu1 %vm213_vm2, %v893_v36 }
 0x6c6   :  { %3561 = vmatpush3.xpose.msk.msra.mxu1 %vm213_vm2, %v1067_v38  ;;  %v2090_v50 = vpop.permute.xlu0 %2089  ;;  %3562 = vmatprep.mubr.msk.f32.mxu1 %vm3915_vm1, %v3914_v20 }
 0x6c7   :  { %3570 = vmatprep.subr.mxu1 %v3914_v20  ;;  %v1917_v54 = vpop.permute.xlu1 %1916 }
 0x6c9   :  { %3563 = vmatmul.mubr.msk.f32.vlgmr.msra.gmra.mrb[14].mxu1 %vm213_vm2, %v1065_v35 }
 0x6ca   :  { %3571 = vmatpush3.xpose.msk.msra.mxu1 %vm213_vm2, %v1239_v43  ;;  %v2261_v51 = vpop.permute.xlu0 %2260  ;;  %3572 = vmatprep.mubr.msk.f32.mxu1 %vm3915_vm1, %v3914_v20 }
 0x6cb   :  { %3580 = vmatprep.subr.mxu1 %v3914_v20  ;;  %v2088_v57 = vpop.permute.xlu1 %2087 }
 0x6cd   :  { %3573 = vmatmul.mubr.msk.f32.vlgmr.msra.gmra.mrb[16].mxu1 %vm213_vm2, %v1237_v37 }
 0x6ce   :  { %3581 = vmatpush3.xpose.msk.msra.mxu1 %vm213_vm2, %v1411_v45  ;;  %v2432_v53 = vpop.permute.xlu0 %2431  ;;  %3582 = vmatprep.mubr.msk.f32.mxu1 %vm3915_vm1, %v3914_v20 }
 0x6cf   :  { %3590 = vmatprep.subr.mxu1 %v3914_v20  ;;  %v2259_v59 = vpop.permute.xlu1 %2258 }
 0x6d1   :  { %3583 = vmatmul.mubr.msk.f32.vlgmr.msra.gmra.mrb[18].mxu1 %vm213_vm2, %v1409_v41 }
 0x6d2   :  { %3591 = vmatpush3.xpose.msk.msra.mxu1 %vm213_vm2, %v1582_v49  ;;  %v2603_v55 = vpop.permute.xlu0 %2602  ;;  %3592 = vmatprep.mubr.msk.f32.mxu1 %vm3915_vm1, %v3914_v20 }
 0x6d3   :  { %3600 = vmatprep.subr.mxu1 %v3914_v20  ;;  %v2430_v60 = vpop.permute.xlu1 %2429 }
 0x6d5   :  { %3593 = vmatmul.mubr.msk.f32.vlgmr.msra.gmra.mrb[20].mxu1 %vm213_vm2, %v4163_v28 }
 0x6d6   :  { %3601 = vmatpush3.xpose.msk.msra.mxu1 %vm213_vm2, %v1747_v44  ;;  %v2774_v56 = vpop.permute.xlu0 %2773  ;;  %3602 = vmatprep.mubr.msk.f32.mxu1 %vm3915_vm1, %v3914_v20 }
 0x6d7   :  { %3610 = vmatprep.subr.mxu1 %v3914_v20  ;;  %v2601_v61 = vpop.permute.xlu1 %2600 }
 0x6d9   :  { %3603 = vmatmul.mubr.msk.f32.vlgmr.msra.gmra.mrb[22].mxu1 %vm213_vm2, %v1745_v52 }
 0x6da   :  { %3611 = vmatpush3.xpose.msk.msra.mxu1 %vm213_vm2, %v1919_v47  ;;  %v639_v58 = vpop.permute.xlu0 %638  ;;  %3612 = vmatprep.mubr.msk.f32.mxu1 %vm3915_vm1, %v3914_v20 }
 0x6db   :  { %3536 = vmatpush3.msra.mxu0 %v639_v58  ;;  %3620 = vmatprep.subr.mxu1 %v3914_v20  ;;  %v2772_v62 = vpop.permute.xlu1 %2771 }
 0x6dc   :  { %3545 = vmatprep.subr.mxu0 %v3914_v20 }
 0x6dd   :  { %3613 = vmatmul.mubr.msk.f32.vlgmr.msra.gmra.mrb[24].mxu1 %vm213_vm2, %v1917_v54 }
 0x6de   :  { %3621 = vmatpush3.xpose.msk.msra.mxu1 %vm213_vm2, %v2090_v50  ;;  %3622 = vmatprep.mubr.msk.f32.mxu1 %vm3915_vm1, %v3914_v20 }
 0x6df   :  { %3630 = vmatprep.subr.mxu1 %v3914_v20 }
 0x6e1   :  { %3623 = vmatmul.mubr.msk.f32.vlgmr.msra.gmra.mrb[26].mxu1 %vm213_vm2, %v2088_v57 }
 0x6e2   :  { %3631 = vmatpush3.xpose.msk.msra.mxu1 %vm213_vm2, %v2261_v51  ;;  %3632 = vmatprep.mubr.msk.f32.mxu1 %vm3915_vm1, %v3914_v20 }
 0x6e3   :  { %3640 = vmatprep.subr.mxu1 %v3914_v20 }
 0x6e5   :  { %3633 = vmatmul.mubr.msk.f32.vlgmr.msra.gmra.mrb[28].mxu1 %vm213_vm2, %v2259_v59 }
 0x6e6   :  { %3641 = vmatpush3.xpose.msk.msra.mxu1 %vm213_vm2, %v2432_v53  ;;  %3642 = vmatprep.mubr.msk.f32.mxu1 %vm3915_vm1, %v3914_v20 }
 0x6e7   :  { %3650 = vmatprep.subr.mxu1 %v3914_v20 }
 0x6e9   :  { %3643 = vmatmul.mubr.msk.f32.vlgmr.msra.gmra.mrb[30].mxu1 %vm213_vm2, %v2430_v60 }
 0x6ea   :  { %3651 = vmatpush3.xpose.msk.msra.mxu1 %vm213_vm2, %v2603_v55  ;;  %3652 = vmatprep.mubr.msk.f32.mxu1 %vm3915_vm1, %v3914_v20 }
 0x6eb   :  { %3660 = vmatprep.subr.mxu1 %v3914_v20 }
 0x6ed   :  { %3653 = vmatmul.mubr.msk.f32.vlgmr.msra.gmra.mrb[32].mxu1 %vm213_vm2, %v2601_v61  ;;  %v4357_v61 = vpop.permute.xlu1 %810 }
 0x6ee   :  { %3661 = vmatpush3.xpose.msk.msra.mxu1 %vm213_vm2, %v2774_v56  ;;  %3662 = vmatprep.mubr.msk.f32.mxu1 %vm3915_vm1, %v3914_v20 }
 0x6f1   :  { %3663 = vmatmul.mubr.msk.f32.vlgmr.msra.gmra.mrb[34].mxu1 %vm213_vm2, %v2772_v62  ;;  %v4359_v62 = vpop.permute.xlu1 %982 }
 0x78c   :  { %v4267_v63 = vpop.f32.mrb[6].mxu1 }
 0x78d   :  { %v3529_v0 = vpop.f32.mrb[7].mxu1 }
 0x78e   :  { %v4361_v0 = vpop.permute.xlu0 %1154 }
 0x790   :  { %v622_v1 = vpop.f32.mrb[8].mxu1 }
 0x791   :  { %v4271_v2 = vsel %vm4102_vm3, %v622_v1, -1e+30  ;;  %v3534_v3 = vpop.f32.mrb[9].mxu1  ;;  %v4363_v1 = vpop.permute.xlu1 %1326 }
 0x792   :  { %v627_v4 = vsel %vm213_vm2, %v4271_v2, -inf }
 0x793   :  { %628 = vmax.xlane.f32.xlu0 %v627_v4 }
 0x794   :  { %v794_v5 = vpop.f32.mrb[10].mxu1 }
 0x795   :  { %v4277_v6 = vsel %vm4102_vm3, %v794_v5, -1e+30  ;;  %v3544_v7 = vpop.f32.mrb[11].mxu1 }
 0x796   :  { %v799_v8 = vsel %vm213_vm2, %v4277_v6, -inf }
 0x797   :  { %800 = vmax.xlane.f32.xlu1 %v799_v8 }
 0x798   :  { %v966_v9 = vpop.f32.mrb[12].mxu1 }
 0x799   :  { %v4283_v10 = vsel %vm4102_vm3, %v966_v9, -1e+30  ;;  %v3554_v11 = vpop.f32.mrb[13].mxu1 }
 0x79a   :  { %v971_v12 = vsel %vm213_vm2, %v4283_v10, -inf }
 0x79b   :  { %972 = vmax.xlane.f32.xlu0 %v971_v12 }
 0x79c   :  { %v1138_v13 = vpop.f32.mrb[14].mxu1 }
 0x79d   :  { %v4289_v14 = vsel %vm4102_vm3, %v1138_v13, -1e+30  ;;  %v3564_v15 = vpop.f32.mrb[15].mxu1 }
 0x79e   :  { %v1143_v16 = vsel %vm213_vm2, %v4289_v14, -inf }
 0x79f   :  { %1144 = vmax.xlane.f32.xlu0 %v1143_v16 }
 0x7a0   :  { %v1310_v17 = vpop.f32.mrb[16].mxu1 }
 0x7a1   :  { %v4295_v18 = vsel %vm4102_vm3, %v1310_v17, -1e+30  ;;  %v3574_v19 = vpop.f32.mrb[17].mxu1 }
 0x7a2   :  { %v1315_v21 = vsel %vm213_vm2, %v4295_v18, -inf }
 0x7a3   :  { %1316 = vmax.xlane.f32.xlu1 %v1315_v21 }
 0x7a4   :  { %v1482_v22 = vpop.f32.mrb[18].mxu1 }
 0x7a5   :  { %v4301_v23 = vsel %vm4102_vm3, %v1482_v22, -1e+30  ;;  %v3584_v24 = vpop.f32.mrb[19].mxu1 }
 0x7a6   :  { %v1487_v25 = vsel %vm213_vm2, %v4301_v23, -inf }
 0x7a7   :  { %1488 = vmax.xlane.f32.xlu0 %v1487_v25 }
 0x7a8   :  { %v1654_v26 = vpop.f32.mrb[20].mxu1 }
 0x7a9   :  { %v4307_v28 = vsel %vm4102_vm3, %v1654_v26, -1e+30  ;;  %v3594_v29 = vpop.f32.mrb[21].mxu1 }
 0x7aa   :  { %v1659_v30 = vsel %vm213_vm2, %v4307_v28, -inf }
 0x7ab   :  { %1660 = vmax.xlane.f32.xlu1 %v1659_v30 }
 0x7ac   :  { %v1818_v31 = vpop.f32.mrb[22].mxu1 }
 0x7ad   :  { %v4313_v32 = vsel %vm4102_vm3, %v1818_v31, -1e+30  ;;  %v3604_v33 = vpop.f32.mrb[23].mxu1 }
 0x7ae   :  { %v1823_v34 = vsel %vm213_vm2, %v4313_v32, -inf }
 0x7af   :  { %1824 = vmax.xlane.f32.xlu0 %v1823_v34 }
 0x7b0   :  { %v1990_v35 = vpop.f32.mrb[24].mxu1 }
 0x7b1   :  { %v4319_v36 = vsel %vm4102_vm3, %v1990_v35, -1e+30  ;;  %v3614_v37 = vpop.f32.mrb[25].mxu1 }
 0x7b2   :  { %v1995_v38 = vsel %vm213_vm2, %v4319_v36, -inf }
 0x7b3   :  { %1996 = vmax.xlane.f32.xlu1 %v1995_v38 }
 0x7b4   :  { %v2161_v39 = vpop.f32.mrb[26].mxu1 }
 0x7b5   :  { %v4325_v40 = vsel %vm4102_vm3, %v2161_v39, -1e+30  ;;  %v3624_v41 = vpop.f32.mrb[27].mxu1 }
 0x7b6   :  { %v2166_v43 = vsel %vm213_vm2, %v4325_v40, -inf }
 0x7b7   :  { %2167 = vmax.xlane.f32.xlu0 %v2166_v43 }
 0x7b8   :  { %v2332_v44 = vpop.f32.mrb[28].mxu1 }
 0x7b9   :  { %v4331_v45 = vsel %vm4102_vm3, %v2332_v44, -1e+30  ;;  %v3634_v47 = vpop.f32.mrb[29].mxu1 }
 0x7ba   :  { %v2337_v49 = vsel %vm213_vm2, %v4331_v45, -inf }
 0x7bb   :  { %2338 = vmax.xlane.f32.xlu1 %v2337_v49 }
 0x7bc   :  { %v2503_v50 = vpop.f32.mrb[30].mxu1 }
 0x7bd   :  { %v3644_v51 = vpop.f32.mrb[31].mxu1  ;;  %v4341_v56 = vsel %vm4102_vm3, %v2503_v50, -1e+30 }
 0x7be   :  { %v2508_v57 = vsel %vm213_vm2, %v4341_v56, -inf }
 0x7c0   :  { %v2674_v52 = vpop.f32.mrb[32].mxu1 }
 0x7c1   :  { %v3654_v53 = vpop.f32.mrb[33].mxu1  ;;  %v4347_v58 = vsel %vm4102_vm3, %v2674_v52, -1e+30 }
 0x7c4   :  { %v2845_v54 = vpop.f32.mrb[34].mxu1 }
 0x7c5   :  { %v3664_v55 = vpop.f32.mrb[35].mxu1  ;;  %v4351_v59 = vsel %vm4102_vm3, %v2845_v54, -1e+30 }
 0x7c6   :  { %v2850_v60 = vsel %vm213_vm2, %v4351_v59, -inf }
 0x7cc   :  { %1498 = vrot.lane.b32.xlu1 %v4086_v42, %s3922_s21  ;;  %v2679_v42 = vsel %vm213_vm2, %v4347_v58, -inf }
 0x7cd   :  { %1835 = vrot.lane.b32.xlu0 %v4161_v27, %s3918_s5  ;;  %s3885_s5 = scalar_lea.vmem %s3327_s4, 256 }
 0x7ce   :  { %p3886_p8 = scmp.ne.s32.totalorder %s3327_s4, %s3885_s5  ;;  %p3891_p10 = scmp.lt.s32.totalorder %s3885_s5, %s3885_s5 }
 0x7d0   :  { %p3892_p11 = por %p3891_p10, %p3890_p9 }
 0x7d2   :  { %p3893_p12 = pnand %p3892_p11, %p3886_p8 }
 0x7ec   :  { %2509 = vmax.xlane.f32.xlu0 %v2508_v57 }
 0x7f0   :  { %2680 = vmax.xlane.f32.xlu1 %v2679_v42  ;;  %2851 = vmax.xlane.f32.xlu0 %v2850_v60 }
 0x820   :  { %v629_v48 = vpop.xlane.xlu0 %628 }
 0x821   :  { %v630_v3 = vsub.f32 %v4271_v2, %v629_v48 }
 0x823   :  { %v631_v4 = vmul.f32 1.442695, %v630_v3 }
 0x824   :  { %v801_v5 = vpop.xlane.xlu1 %800 }
 0x825   :  { %3801 = vpow2.f32 %v631_v4  ;;  %v802_v7 = vsub.f32 %v4277_v6, %v801_v5 }
 0x827   :  { %v803_v8 = vmul.f32 1.442695, %v802_v7 }
 0x828   :  { %v973_v9 = vpop.xlane.xlu0 %972 }
 0x829   :  { %3803 = vpow2.f32 %v803_v8  ;;  %v974_v11 = vsub.f32 %v4283_v10, %v973_v9 }
 0x82b   :  { %v975_v12 = vmul.f32 1.442695, %v974_v11 }
 0x82c   :  { %v1145_v13 = vpop.xlane.xlu0 %1144 }
 0x82d   :  { %3805 = vpow2.f32 %v975_v12  ;;  %v1146_v15 = vsub.f32 %v4289_v14, %v1145_v13 }
 0x82f   :  { %v4369_v16 = vpop.eup %3801  ;;  %v1147_v17 = vmul.f32 1.442695, %v1146_v15 }
 0x830   :  { %v1317_v19 = vpop.xlane.xlu1 %1316  ;;  %v633_v2 = vsel %vm213_vm2, %v4369_v16, 0.0 }
 0x831   :  { %3807 = vpow2.f32 %v1147_v17  ;;  %v1318_v6 = vsub.f32 %v4295_v18, %v1317_v19  ;;  %634 = vadd.xlane.f32.xlu1 %v633_v2 }
 0x833   :  { %v4374_v21 = vpop.eup %3803  ;;  %v1319_v22 = vmul.f32 1.442695, %v1318_v6 }
 0x834   :  { %v805_v10 = vsel %vm213_vm2, %v4374_v21, 0.0  ;;  %v1489_v30 = vpop.xlane.xlu0 %1488 }
 0x835   :  { %3809 = vpow2.f32 %v1319_v22  ;;  %806 = vadd.xlane.f32.xlu0 %v805_v10  ;;  %v1490_v33 = vsub.f32 %v4301_v23, %v1489_v30 }
 0x837   :  { %v4378_v14 = vpop.eup %3805  ;;  %v1491_v38 = vmul.f32 1.442695, %v1490_v33 }
 0x838   :  { %v977_v24 = vsel %vm213_vm2, %v4378_v14, 0.0  ;;  %v1661_v31 = vpop.xlane.xlu1 %1660 }
 0x839   :  { %978 = vadd.xlane.f32.xlu1 %v977_v24  ;;  %v1662_v34 = vsub.f32 %v4307_v28, %v1661_v31  ;;  %3811 = vpow2.f32 %v1491_v38 }
 0x83b   :  { %v4382_v25 = vpop.eup %3807  ;;  %v1663_v41 = vmul.f32 1.442695, %v1662_v34 }
 0x83c   :  { %v1149_v18 = vsel %vm213_vm2, %v4382_v25, 0.0  ;;  %v1825_v35 = vpop.xlane.xlu0 %1824 }
 0x83d   :  { %1150 = vadd.xlane.f32.xlu0 %v1149_v18  ;;  %v1826_v39 = vsub.f32 %v4313_v32, %v1825_v35  ;;  %3813 = vpow2.f32 %v1663_v41 }
 0x83f   :  { %v4386_v26 = vpop.eup %3809  ;;  %v1827_v47 = vmul.f32 1.442695, %v1826_v39 }
 0x840   :  { %v1321_v29 = vsel %vm213_vm2, %v4386_v26, 0.0  ;;  %v1997_v37 = vpop.xlane.xlu1 %1996 }
 0x841   :  { %1322 = vadd.xlane.f32.xlu1 %v1321_v29  ;;  %v1998_v43 = vsub.f32 %v4319_v36, %v1997_v37  ;;  %3815 = vpow2.f32 %v1827_v47 }
 0x843   :  { %v1999_v49 = vmul.f32 1.442695, %v1998_v43  ;;  %v4402_v53 = vpop.eup %3811 }
 0x844   :  { %v2168_v44 = vpop.xlane.xlu0 %2167 }
 0x845   :  { %v2169_v50 = vsub.f32 %v4325_v40, %v2168_v44  ;;  %3817 = vpow2.f32 %v1999_v49  ;;  %v1493_v40 = vsel %vm213_vm2, %v4402_v53, 0.0 }
 0x847   :  { %v2170_v23 = vmul.f32 1.442695, %v2169_v50  ;;  %v4404_v32 = vpop.eup %3813 }
 0x848   :  { %v2339_v51 = vpop.xlane.xlu1 %2338  ;;  %v1665_v54 = vsel %vm213_vm2, %v4404_v32, 0.0  ;;  %v4433_v12 = vpop.permute.xlu0 %1835 }
 0x849   :  { %v2340_v28 = vsub.f32 %v4331_v45, %v2339_v51  ;;  %3819 = vpow2.f32 %v2170_v23 }
 0x84b   :  { %v2341_v52 = vmul.f32 1.442695, %v2340_v28  ;;  %v4406_v36 = vpop.eup %3815 }
 0x84c   :  { %v4414_v45 = vpop.permute.xlu1 %1498  ;;  %v1829_v57 = vsel %vm213_vm2, %v4406_v36, 0.0 }
 0x84d   :  { %3821 = vpow2.f32 %v2341_v52 }
 0x84f   :  { %v4412_v55 = vpop.eup %3817 }
 0x850   :  { %v2001_v42 = vsel %vm213_vm2, %v4412_v55, 0.0 }
 0x852   :  { %2006 = vrot.lane.b32.xlu1 %v4161_v27, %s3923_s22 }
 0x853   :  { %2177 = vrot.lane.b32.xlu0 %v4161_v27, %s3925_s24  ;;  %v4420_v60 = vpop.eup %3819 }
 0x854   :  { %v2172_v3 = vsel %vm213_vm2, %v4420_v60, 0.0 }
 0x857   :  { %2348 = vrot.lane.b32.xlu0 %v4161_v27, %s3927_s26  ;;  %v4424_v4 = vpop.eup %3821 }
 0x858   :  { %v2343_v8 = vsel %vm213_vm2, %v4424_v4, 0.0 }
 0x876   :  { %1666 = vadd.xlane.f32.xlu1 %v1665_v54  ;;  %1494 = vadd.xlane.f32.xlu0 %v1493_v40 }
 0x879   :  { %v2510_v13 = vpop.xlane.xlu0 %2509 }
 0x87a   :  { %1830 = vadd.xlane.f32.xlu1 %v1829_v57  ;;  %2002 = vadd.xlane.f32.xlu0 %v2001_v42 }
 0x87d   :  { %v2681_v48 = vpop.xlane.xlu1 %2680  ;;  %v2852_v15 = vpop.xlane.xlu0 %2851 }
 0x87e   :  { %v2682_v5 = vsub.f32 %v4347_v58, %v2681_v48  ;;  %2173 = vadd.xlane.f32.xlu1 %v2172_v3  ;;  %v2511_v58 = vsub.f32 %v4341_v56, %v2510_v13  ;;  %v2853_v19 = vsub.f32 %v4351_v59, %v2852_v15 }
 0x880   :  { %v2683_v7 = vmul.f32 1.442695, %v2682_v5  ;;  %v2512_v17 = vmul.f32 1.442695, %v2511_v58  ;;  %v2854_v2 = vmul.f32 1.442695, %v2853_v19 }
 0x882   :  { %3823 = vpow2.f32 %v2683_v7  ;;  %2344 = vadd.xlane.f32.xlu1 %v2343_v8 }
 0x883   :  { %3825 = vpow2.f32 %v2512_v17 }
 0x884   :  { %3827 = vpow2.f32 %v2854_v2 }
 0x88c   :  { %v4429_v9 = vpop.eup %3823 }
 0x88d   :  { %v2685_v11 = vsel %vm213_vm2, %v4429_v9, 0.0  ;;  %v4443_v6 = vpop.eup %3825 }
 0x88e   :  { %2686 = vadd.xlane.f32.xlu1 %v2685_v11  ;;  %v2514_v22 = vsel %vm213_vm2, %v4443_v6, 0.0  ;;  %v4447_v10 = vpop.eup %3827 }
 0x88f   :  { %v2856_v56 = vsel %vm213_vm2, %v4447_v10, 0.0 }
 0x890   :  { %2519 = vrot.lane.b32.xlu0 %v4161_v27, %s3920_s0 }
 0x89f   :  { %2690 = vrot.lane.b32.xlu1 %v4161_v27, %s3921_s20 }
 0x8a3   :  { %543 = vrot.lane.b32.xlu1 %v4267_v63, %s3913_s14 }
 0x8af   :  { %2515 = vadd.xlane.f32.xlu0 %v2514_v22 }
 0x8b3   :  { %2857 = vadd.xlane.f32.xlu0 %v2856_v56 }
 0x8be   :  { %v635_v59 = vpop.xlane.xlu1 %634 }
 0x8bf   :  { %3829 = vrcp.f32 %v635_v59 }
 0x8c2   :  { %v807_v24 = vpop.xlane.xlu0 %806 }
 0x8c3   :  { %3831 = vrcp.f32 %v807_v24 }
 0x8c6   :  { %v979_v18 = vpop.xlane.xlu1 %978 }
 0x8c7   :  { %3833 = vrcp.f32 %v979_v18 }
 0x8c9   :  { %v3830_v63 = vpop.eup %3829  ;;  %2861 = vrot.lane.b32.xlu0 %v4161_v27, %s3922_s21 }
 0x8ca   :  { %v637_v29 = vmul.f32 %v3830_v63, %v4369_v16  ;;  %v1151_v30 = vpop.xlane.xlu0 %1150 }
 0x8cb   :  { %3835 = vrcp.f32 %v1151_v30 }
 0x8cc   :  { %3538 = vmatmul.mubr.msk.f32.vlgmr.msra.gmra.mrb[4].mxu0 %vm213_vm2, %v637_v29 }
 0x8cd   :  { %v3832_v31 = vpop.eup %3831  ;;  %3546 = vmatpush3.msra.mxu0 %v4357_v61  ;;  %3547 = vmatprep.mubr.msk.f32.mxu0 %vm3915_vm1, %v3914_v20 }
 0x8ce   :  { %v809_v33 = vmul.f32 %v3832_v31, %v4374_v21  ;;  %v1323_v34 = vpop.xlane.xlu1 %1322  ;;  %3555 = vmatprep.subr.mxu0 %v3914_v20 }
 0x8cf   :  { %3837 = vrcp.f32 %v1323_v34 }
 0x8d0   :  { %3548 = vmatmul.mubr.msk.f32.vlgmr.msra.gmra.mrb[6].mxu0 %vm213_vm2, %v809_v33 }
 0x8d1   :  { %v3834_v35 = vpop.eup %3833  ;;  %3556 = vmatpush3.msra.mxu0 %v4359_v62  ;;  %3557 = vmatprep.mubr.msk.f32.mxu0 %vm3915_vm1, %v3914_v20 }
 0x8d2   :  { %v981_v16 = vmul.f32 %v3834_v35, %v4378_v14  ;;  %3565 = vmatprep.subr.mxu0 %v3914_v20  ;;  %v2944_v35 = vld [vmem:[%s4788_s2] sm:$0xff] }
 0x8d4   :  { %3558 = vmatmul.mubr.msk.f32.vlgmr.msra.gmra.mrb[8].mxu0 %vm213_vm2, %v981_v16  ;;  %v2945_v16 = vld [vmem:[%s4788_s2 + $0x8] sm:$0xff] }
 0x8d5   :  { %v3836_v61 = vpop.eup %3835  ;;  %3566 = vmatpush3.msra.mxu0 %v4361_v0  ;;  %3567 = vmatprep.mubr.msk.f32.mxu0 %vm3915_vm1, %v3914_v20  ;;  %v2178_v0 = vpop.permute.xlu0 %2177 }
 0x8d6   :  { %v1153_v21 = vmul.f32 %v3836_v61, %v4382_v25  ;;  %3575 = vmatprep.subr.mxu0 %v3914_v20  ;;  %v2007_v25 = vpop.permute.xlu1 %2006  ;;  %v3705_v61 = vpack.c.bf16 %v2945_v16, %v2944_v35  ;;  %v3092_v16 = vld [vmem:[%s4794_s8 + $0x20] sm:$0xff] }
 0x8d8   :  { %3568 = vmatmul.mubr.msk.f32.vlgmr.msra.gmra.mrb[10].mxu0 %vm213_vm2, %v1153_v21 }
 0x8d9   :  { %v3838_v62 = vpop.eup %3837  ;;  %3576 = vmatpush3.msra.mxu0 %v4363_v1  ;;  %3577 = vmatprep.mubr.msk.f32.mxu0 %vm3915_vm1, %v3914_v20  ;;  %v2349_v37 = vpop.permute.xlu0 %2348 }
 0x8da   :  { %v1325_v14 = vmul.f32 %v3838_v62, %v4386_v26  ;;  %3585 = vmatprep.subr.mxu0 %v3914_v20  ;;  %v2946_v62 = vld [vmem:[%s4788_s2 + $0x10] sm:$0xff] }
 0x8dc   :  { %3578 = vmatmul.mubr.msk.f32.vlgmr.msra.gmra.mrb[12].mxu0 %vm213_vm2, %v1325_v14  ;;  %v2947_v14 = vld [vmem:[%s4788_s2 + $0x18] sm:$0xff] }
 0x8dd   :  { %3586 = vmatpush3.msra.mxu0 %v4414_v45  ;;  %3587 = vmatprep.mubr.msk.f32.mxu0 %vm3915_vm1, %v3914_v20 }
 0x8de   :  { %3595 = vmatprep.subr.mxu0 %v3914_v20 }
 0x903   :  { %v1667_v1 = vpop.xlane.xlu1 %1666  ;;  %v1495_v38 = vpop.xlane.xlu0 %1494 }
 0x904   :  { %3839 = vrcp.f32 %v1495_v38 }
 0x905   :  { %3841 = vrcp.f32 %v1667_v1  ;;  %v2949_v1 = vld [vmem:[%s4788_s2 + $0x28] sm:$0xff] }
 0x907   :  { %v1831_v39 = vpop.xlane.xlu1 %1830  ;;  %v2003_v26 = vpop.xlane.xlu0 %2002 }
 0x908   :  { %3843 = vrcp.f32 %v1831_v39  ;;  %v2950_v39 = vld [vmem:[%s4788_s2 + $0x30] sm:$0xff] }
 0x909   :  { %3845 = vrcp.f32 %v2003_v26  ;;  %v2951_v26 = vld [vmem:[%s4788_s2 + $0x38] sm:$0xff] }
 0x90b   :  { %v2174_v41 = vpop.xlane.xlu1 %2173  ;;  %v2520_v45 = vpop.permute.xlu0 %2519 }
 0x90c   :  { %3847 = vrcp.f32 %v2174_v41 }
 0x90e   :  { %v3840_v43 = vpop.eup %3839 }
 0x90f   :  { %v1497_v44 = vmul.f32 %v3840_v43, %v4402_v53  ;;  %v3842_v47 = vpop.eup %3841  ;;  %v2345_v50 = vpop.xlane.xlu1 %2344  ;;  %v3717_v43 = vpack.c.bf16 %v2951_v26, %v2950_v39  ;;  %v3103_v39 = vld [vmem:[%s4794_s8 + $0x78] sm:$0xff] }
 0x910   :  { %v1669_v49 = vmul.f32 %v3842_v47, %v4404_v32  ;;  %3849 = vrcp.f32 %v2345_v50 }
 0x911   :  { %3588 = vmatmul.mubr.msk.f32.vlgmr.msra.gmra.mrb[14].mxu0 %vm213_vm2, %v1497_v44 }
 0x912   :  { %3596 = vmatpush3.msra.mxu0 %v4161_v27  ;;  %3597 = vmatprep.mubr.msk.f32.mxu0 %vm3915_vm1, %v3914_v20  ;;  %v3844_v51 = vpop.eup %3843 }
 0x913   :  { %3605 = vmatprep.subr.mxu0 %v3914_v20  ;;  %v1833_v23 = vmul.f32 %v3844_v51, %v4406_v36  ;;  %v3846_v27 = vpop.eup %3845 }
 0x914   :  { %v2005_v52 = vmul.f32 %v3846_v27, %v4412_v55 }
 0x915   :  { %3598 = vmatmul.mubr.msk.f32.vlgmr.msra.gmra.mrb[16].mxu0 %vm213_vm2, %v1669_v49 }
 0x916   :  { %3606 = vmatpush3.msra.mxu0 %v4433_v12  ;;  %3607 = vmatprep.mubr.msk.f32.mxu0 %vm3915_vm1, %v3914_v20  ;;  %v3848_v53 = vpop.eup %3847 }
 0x917   :  { %3615 = vmatprep.subr.mxu0 %v3914_v20  ;;  %v2176_v36 = vmul.f32 %v3848_v53, %v4420_v60 }
 0x919   :  { %3608 = vmatmul.mubr.msk.f32.vlgmr.msra.gmra.mrb[18].mxu0 %vm213_vm2, %v1833_v23 }
 0x91a   :  { %3616 = vmatpush3.msra.mxu0 %v2007_v25  ;;  %3617 = vmatprep.mubr.msk.f32.mxu0 %vm3915_vm1, %v3914_v20  ;;  %v3850_v54 = vpop.eup %3849 }
 0x91b   :  { %v2687_v28 = vpop.xlane.xlu1 %2686  ;;  %3625 = vmatprep.subr.mxu0 %v3914_v20  ;;  %v2347_v55 = vmul.f32 %v3850_v54, %v4424_v4 }
 0x91d   :  { %3618 = vmatmul.mubr.msk.f32.vlgmr.msra.gmra.mrb[20].mxu0 %vm213_vm2, %v2005_v52 }
 0x91e   :  { %3626 = vmatpush3.msra.mxu0 %v2178_v0  ;;  %3627 = vmatprep.mubr.msk.f32.mxu0 %vm3915_vm1, %v3914_v20  ;;  %v3709_v0 = vpack.c.bf16 %v2947_v14, %v2946_v62  ;;  %v3097_v62 = vld [vmem:[%s4794_s8 + $0x48] sm:$0xff]  ;;  %v3099_v14 = vld [vmem:[%s4794_s8 + $0x58] sm:$0xff] }
 0x91f   :  { %v2691_v32 = vpop.permute.xlu1 %2690  ;;  %3635 = vmatprep.subr.mxu0 %v3914_v20 }
 0x921   :  { %3628 = vmatmul.mubr.msk.f32.vlgmr.msra.gmra.mrb[22].mxu0 %vm213_vm2, %v2176_v36 }
 0x922   :  { %3636 = vmatpush3.msra.mxu0 %v2349_v37  ;;  %3637 = vmatprep.mubr.msk.f32.mxu0 %vm3915_vm1, %v3914_v20  ;;  %v2948_v37 = vld [vmem:[%s4788_s2 + $0x20] sm:$0xff] }
 0x923   :  { %v544_v40 = vpop.permute.xlu1 %543  ;;  %3645 = vmatprep.subr.mxu0 %v3914_v20  ;;  %v3713_v38 = vpack.c.bf16 %v2949_v1, %v2948_v37  ;;  %v3098_v37 = vld [vmem:[%s4794_s8 + $0x50] sm:$0xff] }
 0x924   :  { %547 = vst.msk [vmem:[#allocation2] sm:$0xff] %vm546_vm4, %v544_v40 }
 0x925   :  { %3638 = vmatmul.mubr.msk.f32.vlgmr.msra.gmra.mrb[24].mxu0 %vm213_vm2, %v2347_v55 }
 0x926   :  { %3646 = vmatpush3.msra.mxu0 %v2520_v45  ;;  %3647 = vmatprep.mubr.msk.f32.mxu0 %vm3915_vm1, %v3914_v20 }
 0x927   :  { %3655 = vmatprep.subr.mxu0 %v3914_v20 }
 0x93c   :  { %v2516_v57 = vpop.xlane.xlu0 %2515 }
 0x93d   :  { %3851 = vrcp.f32 %v2516_v57 }
 0x93e   :  { %3853 = vrcp.f32 %v2687_v28 }
 0x940   :  { %v2858_v42 = vpop.xlane.xlu0 %2857 }
 0x941   :  { %3855 = vrcp.f32 %v2858_v42 }
 0x944   :  { %v2862_v7 = vpop.permute.xlu0 %2861 }
 0x947   :  { %v3852_v60 = vpop.eup %3851 }
 0x948   :  { %v2518_v48 = vmul.f32 %v3852_v60, %v4443_v6  ;;  %v3854_v3 = vpop.eup %3853 }
 0x949   :  { %v2689_v4 = vmul.f32 %v3854_v3, %v4429_v9  ;;  %v3861_v3 = vld [vmem:[#allocation3 + $0x8] sm:$0xff] }
 0x94a   :  { %3648 = vmatmul.mubr.msk.f32.vlgmr.msra.gmra.mrb[26].mxu0 %vm213_vm2, %v2518_v48  ;;  %v3392_v48 = vld [vmem:[%s4789_s3] ss:$0 sm:$0xff] }
 0x94b   :  { %3656 = vmatpush3.msra.mxu0 %v2691_v32  ;;  %3657 = vmatprep.mubr.msk.f32.mxu0 %vm3915_vm1, %v3914_v20  ;;  %v3856_v5 = vpop.eup %3855 }
 0x94c   :  { %3665 = vmatprep.subr.mxu0 %v3914_v20  ;;  %v2860_v8 = vmul.f32 %v3856_v5, %v4447_v10 }
 0x94e   :  { %3658 = vmatmul.mubr.msk.f32.vlgmr.msra.gmra.mrb[28].mxu0 %vm213_vm2, %v2689_v4 }
 0x94f   :  { %3666 = vmatpush3.msra.mxu0 %v2862_v7  ;;  %3667 = vmatprep.mubr.msk.f32.mxu0 %vm3915_vm1, %v3914_v20  ;;  %v3862_v7 = vld [vmem:[#allocation3] sm:$0xff] }
 0x950   :  { %3706 = vmatprep.subr.bf16.mxu0 %v3705_v61 }
 0x952   :  { %3668 = vmatmul.mubr.msk.f32.vlgmr.msra.gmra.mrb[30].mxu0 %vm213_vm2, %v2860_v8 }
 0x953   :  { %3708 = vmatpush3.bf16.msra.mxu0 %v3705_v61  ;;  %v3094_v61 = vld [vmem:[%s4794_s8 + $0x30] sm:$0xff] }
 0x954   :  { %3710 = vmatprep.subr.bf16.mxu0 %v3709_v0 }
 0x957   :  { %3712 = vmatpush3.bf16.msra.mxu0 %v3709_v0  ;;  %v3729_v0 = vpack.c.bf16 %v3099_v14, %v3097_v62  ;;  %v3393_v14 = vld [vmem:[%s4792_s6] ss:$0 sm:$0xff] }
 0x958   :  { %3714 = vmatprep.subr.bf16.mxu0 %v3713_v38 }
 0x95b   :  { %3716 = vmatpush3.bf16.msra.mxu0 %v3713_v38  ;;  %v3101_v38 = vld [vmem:[%s4794_s8 + $0x68] sm:$0xff] }
 0x95c   :  { %3718 = vmatprep.subr.bf16.mxu0 %v3717_v43  ;;  %v3733_v26 = vpack.c.bf16 %v3103_v39, %v3101_v38 }
 0x95f   :  { %3720 = vmatpush3.bf16.msra.mxu0 %v3717_v43  ;;  %v3102_v43 = vld [vmem:[%s4794_s8 + $0x70] sm:$0xff] }
 0x99f   :  { %v710_v11 = vpop.f32.mrb[4].mxu0 }
 0x9a0   :  { %715 = vrot.lane.b32.xlu0 %v710_v11, %s3929_s28  ;;  %v3539_v12 = vpop.f32.mrb[5].mxu0 }
 0x9a3   :  { %v882_v13 = vpop.f32.mrb[6].mxu0 }
 0x9a4   :  { %887 = vrot.lane.b32.xlu0 %v882_v13, %s3928_s27  ;;  %v3549_v9 = vpop.f32.mrb[7].mxu0 }
 0x9a7   :  { %v1054_v58 = vpop.f32.mrb[8].mxu0 }
 0x9a8   :  { %1059 = vrot.lane.b32.xlu0 %v1054_v58, %s3926_s25  ;;  %v3559_v15 = vpop.f32.mrb[9].mxu0 }
 0x9ab   :  { %v1226_v17 = vpop.f32.mrb[10].mxu0 }
 0x9ac   :  { %1231 = vrot.lane.b32.xlu0 %v1226_v17, %s3924_s23  ;;  %v3569_v19 = vpop.f32.mrb[11].mxu0 }
 0x9af   :  { %v1398_v2 = vpop.f32.mrb[12].mxu0 }
 0x9b0   :  { %1403 = vrot.lane.b32.xlu0 %v1398_v2, %s3919_s19  ;;  %v3579_v6 = vpop.f32.mrb[13].mxu0 }
 0x9e4   :  { %v1570_v22 = vpop.f32.mrb[14].mxu0 }
 0x9e5   :  { %1575 = vrot.lane.b32.xlu0 %v1570_v22, %s3916_s1  ;;  %v3589_v10 = vpop.f32.mrb[15].mxu0 }
 0x9e8   :  { %v1739_v56 = vpop.f32.mrb[16].mxu0 }
 0x9e9   :  { %1743 = vst.msk [vmem:[#allocation2 + $0x8] sm:$0xff] %vm213_vm2, %v1739_v56  ;;  %v3599_v59 = vpop.f32.mrb[17].mxu0 }
 0x9ec   :  { %v1907_v24 = vpop.f32.mrb[18].mxu0 }
 0x9ed   :  { %1912 = vrot.lane.b32.xlu1 %v1907_v24, %s3913_s14  ;;  %v3609_v18 = vpop.f32.mrb[19].mxu0  ;;  %v3089_v24 = vld [vmem:[%s4794_s8 + $0x8] sm:$0xff] }
 0x9ee   :  { %v3091_v18 = vld [vmem:[%s4794_s8 + $0x18] sm:$0xff] }
 0x9f0   :  { %v2078_v63 = vpop.f32.mrb[20].mxu0 }
 0x9f1   :  { %2083 = vrot.lane.b32.xlu1 %v2078_v63, %s3929_s28  ;;  %v3619_v29 = vpop.f32.mrb[21].mxu0  ;;  %v3721_v63 = vpack.c.bf16 %v3091_v18, %v3089_v24  ;;  %v3214_v24 = vld [vmem:[%s4796_s10 + $0x58] sm:$0xff]  ;;  %v3231_v18 = vld [vmem:[%s4796_s10 + $0xe0] sm:$0xff] }
 0x9f2   :  { %v3088_v29 = vld [vmem:[%s4794_s8] sm:$0xff] }
 0x9f3   :  { %3722 = vmatprep.subr.bf16.mxu0 %v3721_v63  ;;  %v3232_v63 = vld [vmem:[%s4796_s10 + $0xe8] sm:$0xff] }
 0x9f4   :  { %v2249_v30 = vpop.f32.mrb[22].mxu0 }
 0x9f5   :  { %2254 = vrot.lane.b32.xlu1 %v2249_v30, %s3928_s27  ;;  %v3629_v31 = vpop.f32.mrb[23].mxu0  ;;  %v3090_v30 = vld [vmem:[%s4794_s8 + $0x10] sm:$0xff] }
 0x9f6   :  { %v3723_v31 = vpack.c.bf16 %v3090_v30, %v3088_v29  ;;  %v3761_v30 = vpack.c.bf16 %v3232_v63, %v3231_v18 }
 0x9f8   :  { %v2420_v33 = vpop.f32.mrb[24].mxu0 }
 0x9f9   :  { %2425 = vrot.lane.b32.xlu1 %v2420_v33, %s3926_s25  ;;  %v3639_v34 = vpop.f32.mrb[25].mxu0  ;;  %v3093_v33 = vld [vmem:[%s4794_s8 + $0x28] sm:$0xff] }
 0x9fa   :  { %v3095_v34 = vld [vmem:[%s4794_s8 + $0x38] sm:$0xff] }
 0x9fb   :  { %v3725_v35 = vpack.c.bf16 %v3095_v34, %v3093_v33 }
 0xa12   :  { %v716_v21 = vpop.permute.xlu0 %715 }
 0xa13   :  { %719 = vst.msk [vmem:[#allocation2] sm:$0xff] %vm718_vm5, %v716_v21  ;;  %v3727_v21 = vpack.c.bf16 %v3094_v61, %v3092_v16 }
 0xa16   :  { %v888_v25 = vpop.permute.xlu0 %887 }
 0xa17   :  { %891 = vst.msk [vmem:[#allocation2] sm:$0xff] %vm890_vm6, %v888_v25  ;;  %v3096_v25 = vld [vmem:[%s4794_s8 + $0x40] sm:$0xff] }
 0xa18   :  { %v3731_v1 = vpack.c.bf16 %v3098_v37, %v3096_v25  ;;  %v3394_v37 = vld [vmem:[%s4793_s7] ss:$0 sm:$0xff] }
 0xa1a   :  { %v1060_v41 = vpop.permute.xlu0 %1059 }
 0xa1b   :  { %1063 = vst.msk [vmem:[#allocation2] sm:$0xff] %vm1062_vm7, %v1060_v41  ;;  %v3100_v41 = vld [vmem:[%s4794_s8 + $0x60] sm:$0xff] }
 0xa1d   :  { %v2591_v44 = vpop.f32.mrb[26].mxu0 }
 0xa1e   :  { %v1232_v47 = vpop.permute.xlu0 %1231  ;;  %2596 = vrot.lane.b32.xlu1 %v2591_v44, %s3924_s23  ;;  %v3649_v49 = vpop.f32.mrb[27].mxu0  ;;  %v3735_v44 = vpack.c.bf16 %v3102_v43, %v3100_v41  ;;  %v3233_v43 = vld [vmem:[%s4796_s10 + $0xf0] sm:$0xff] }
 0xa1f   :  { %1235 = vst.msk [vmem:[#allocation2] sm:$0xff] %vm1234_vm8, %v1232_v47  ;;  %v3219_v47 = vld [vmem:[%s4796_s10 + $0x80] sm:$0xff]  ;;  %v3220_v49 = vld [vmem:[%s4796_s10 + $0x88] sm:$0xff] }
 0xa21   :  { %v2762_v50 = vpop.f32.mrb[28].mxu0 }
 0xa22   :  { %v1404_v51 = vpop.permute.xlu0 %1403  ;;  %2767 = vrot.lane.b32.xlu1 %v2762_v50, %s3919_s19  ;;  %v3659_v23 = vpop.f32.mrb[29].mxu0  ;;  %v3203_v50 = vld [vmem:[%s4796_s10] sm:$0xff] }
 0xa23   :  { %1407 = vst.msk [vmem:[#allocation2] sm:$0xff] %vm1406_vm9, %v1404_v51  ;;  %v3737_v51 = vpack.c.bf16 %v3220_v49, %v3219_v47  ;;  %v3204_v23 = vld [vmem:[%s4796_s10 + $0x8] sm:$0xff]  ;;  %v3217_v47 = vld [vmem:[%s4796_s10 + $0x70] sm:$0xff]  ;;  %v3218_v49 = vld [vmem:[%s4796_s10 + $0x78] sm:$0xff] }
 0xa25   :  { %v2933_v27 = vpop.f32.mrb[30].mxu0  ;;  %3738 = vmatprep.subr.bf16.mxu1 %v3737_v51  ;;  %v3108_v51 = vsub.s32 0, %v4099_v46 }
 0xa26   :  { %2938 = vrot.lane.b32.xlu0 %v2933_v27, %s3916_s1  ;;  %v3669_v28 = vpop.f32.mrb[31].mxu0  ;;  %v3221_v27 = vld [vmem:[%s4796_s10 + $0x90] sm:$0xff] }
 0xa27   :  { %v3222_v28 = vld [vmem:[%s4796_s10 + $0x98] sm:$0xff] }
 0xa57   :  { %v1576_v52 = vpop.permute.xlu0 %1575 }
 0xa58   :  { %1579 = vst.msk [vmem:[#allocation2] sm:$0xff] %vm1578_vm10, %v1576_v52  ;;  %v3739_v52 = vpack.c.bf16 %v3204_v23, %v3203_v50  ;;  %v3767_v50 = vpack.c.bf16 %v3218_v49, %v3217_v47  ;;  %v3104_v23 = vld [vmem:[%s4795_s9] sm:$0x3] }
 0xa5a   :  { %3740 = vmatpush3.bf16.msra.mxu1 %v3739_v52 }
 0xa5f   :  { %v1913_v53 = vpop.permute.xlu1 %1912  ;;  %v2942_v32 = vld [vmem:[#allocation2] sm:$0xff] }
 0xa60   :  { %1915 = vst.msk [vmem:[#allocation2 + $0x8] sm:$0xff] %vm546_vm4, %v1913_v53  ;;  %3686 = vmatprep.mubr.msk.f32.mxu0 %vm60_vm0, %v2942_v32  ;;  %v3741_v53 = vpack.c.bf16 %v3222_v28, %v3221_v27  ;;  %v3205_v32 = vld [vmem:[%s4796_s10 + $0x10] sm:$0xff]  ;;  %v3112_v27 = vsub.s32 1, %v4099_v46  ;;  %v3109_v28 = vrot.slane %v3104_v23, %v3108_v51  ;;  %v3397_v46 = vld [vmem:[%s4797_s11] ss:$0 sm:$0xff] }
 0xa62   :  { %3742 = vmatprep.subr.bf16.mxu1 %v3741_v53  ;;  %v3113_v52 = vrot.slane %v3104_v23, %v3112_v27 }
 0xa63   :  { %v2084_v36 = vpop.permute.xlu1 %2083 }
 0xa64   :  { %2086 = vst.msk [vmem:[#allocation2 + $0x8] sm:$0xff] %vm718_vm5, %v2084_v36  ;;  %v3206_v36 = vld [vmem:[%s4796_s10 + $0x18] sm:$0xff] }
 0xa67   :  { %v2255_v54 = vpop.permute.xlu1 %2254 }
 0xa68   :  { %2257 = vst.msk [vmem:[#allocation2 + $0x8] sm:$0xff] %vm890_vm6, %v2255_v54  ;;  %v3223_v54 = vld [vmem:[%s4796_s10 + $0xa0] sm:$0xff] }
 0xa6b   :  { %v2426_v40 = vpop.permute.xlu1 %2425 }
 0xa6c   :  { %2428 = vst.msk [vmem:[#allocation2 + $0x8] sm:$0xff] %vm1062_vm7, %v2426_v40  ;;  %v3224_v40 = vld [vmem:[%s4796_s10 + $0xa8] sm:$0xff] }
 0xa90   :  { %v2597_v55 = vpop.permute.xlu1 %2596 }
 0xa91   :  { %2599 = vst.msk [vmem:[#allocation2 + $0x8] sm:$0xff] %vm1234_vm8, %v2597_v55  ;;  %v3743_v55 = vpack.c.bf16 %v3206_v36, %v3205_v32 }
 0xa93   :  { %3744 = vmatpush3.bf16.msra.mxu1 %v3743_v55 }
 0xa94   :  { %v2768_v45 = vpop.permute.xlu1 %2767 }
 0xa95   :  { %2770 = vst.msk [vmem:[#allocation2 + $0x8] sm:$0xff] %vm1406_vm9, %v2768_v45  ;;  %v3745_v45 = vpack.c.bf16 %v3224_v40, %v3223_v54 }
 0xa97   :  { %3746 = vmatprep.subr.bf16.mxu1 %v3745_v45 }
 0xa98   :  { %v2939_v57 = vpop.permute.xlu0 %2938 }
 0xa99   :  { %2941 = vst.msk [vmem:[#allocation2 + $0x8] sm:$0xff] %vm1578_vm10, %v2939_v57  ;;  %v3207_v57 = vld [vmem:[%s4796_s10 + $0x20] sm:$0xff] }
 0xaa0   :  { %v2943_v42 = vld [vmem:[#allocation2 + $0x8] sm:$0xff] }
 0xaa1   :  { %3687 = vmatmul.mubr.msk.f32.vlgmr.msra.gmra.mrb[32].mxu0 %vm60_vm0, %v2943_v42  ;;  %v3208_v42 = vld [vmem:[%s4796_s10 + $0x28] sm:$0xff] }
 0xaa2   :  { %3186 = vmatprep.mubr.f32.mxu0 %v3914_v20  ;;  %3724 = vmatpush1.bf16.msra.mxu0 %v3723_v31 }
 0xaa3   :  { %3726 = vmatprep.subr.bf16.mxu0 %v3725_v35 }
 0xaa6   :  { %3728 = vmatpush1.bf16.msra.mxu0 %v3727_v21 }
 0xaa7   :  { %3730 = vmatprep.subr.bf16.mxu0 %v3729_v0 }
 0xaaa   :  { %3732 = vmatpush1.bf16.msra.mxu0 %v3731_v1 }
 0xaab   :  { %3734 = vmatprep.subr.bf16.mxu0 %v3733_v26 }
 0xaae   :  { %3736 = vmatpush1.bf16.msra.mxu0 %v3735_v44 }
 0xb74   :  { %v3688_v60 = vpop.f32.mrb[32].mxu0 }
 0xb75   :  { %v3034_v4 = vadd.f32 %v3861_v3, %v3688_v60  ;;  %v3024_v5 = vpop.f32.mrb[33].mxu0  ;;  %v3225_v60 = vld [vmem:[%s4796_s10 + $0xb0] sm:$0xff]  ;;  %v3747_v3 = vpack.c.bf16 %v3208_v42, %v3207_v57 }
 0xb76   :  { %v3033_v8 = vadd.f32 %v3862_v7, %v3024_v5  ;;  %v3209_v5 = vld [vmem:[%s4796_s10 + $0x30] sm:$0xff]  ;;  %v3210_v7 = vld [vmem:[%s4796_s10 + $0x38] sm:$0xff] }
 0xb77   :  { %v4584_v11 = vadd.f32 %v3392_v48, %v3034_v4  ;;  %3748 = vmatpush3.bf16.msra.mxu1 %v3747_v3 }
 0xb78   :  { %v4586_v12 = vadd.f32 %v3392_v48, %v3033_v8  ;;  %v3226_v48 = vld [vmem:[%s4796_s10 + $0xb8] sm:$0xff]  ;;  %v3227_v8 = vld [vmem:[%s4796_s10 + $0xc0] sm:$0xff] }
 0xb79   :  { %v3049_v13 = vsel %vm60_vm0, %v4584_v11, 0.0  ;;  %v3749_v4 = vpack.c.bf16 %v3226_v48, %v3225_v60 }
 0xb7a   :  { %3050 = vadd.xlane.f32.xlu0 %v3049_v13  ;;  %v3046_v9 = vsel %vm60_vm0, %v4586_v12, 0.0  ;;  %v3228_v13 = vld [vmem:[%s4796_s10 + $0xc8] sm:$0xff] }
 0xb7b   :  { %3047 = vadd.xlane.f32.xlu1 %v3046_v9  ;;  %v3751_v9 = vpack.c.bf16 %v3210_v7, %v3209_v5  ;;  %3750 = vmatprep.subr.bf16.mxu1 %v3749_v4 }
 0xb7d   :  { %3752 = vmatpush3.bf16.msra.mxu1 %v3751_v9 }
 0xc07   :  { %v3051_v58 = vpop.xlane.xlu0 %3050 }
 0xc08   :  { %v3053_v15 = vmul.f32 0.015625, %v3051_v58  ;;  %v3048_v17 = vpop.xlane.xlu1 %3047  ;;  %v3753_v58 = vpack.c.bf16 %v3228_v13, %v3227_v8 }
 0xc09   :  { %v3052_v19 = vmul.f32 0.015625, %v3048_v17  ;;  %v3212_v17 = vld [vmem:[%s4796_s10 + $0x48] sm:$0xff] }
 0xc0a   :  { %v4593_v2 = vsub.f32 %v4584_v11, %v3053_v15  ;;  %v3211_v15 = vld [vmem:[%s4796_s10 + $0x40] sm:$0xff]  ;;  %3754 = vmatprep.subr.bf16.mxu1 %v3753_v58 }
 0xc0b   :  { %v4596_v6 = vsub.f32 %v4586_v12, %v3052_v19  ;;  %v3229_v19 = vld [vmem:[%s4796_s10 + $0xd0] sm:$0xff] }
 0xc0c   :  { %v3057_v22 = vmul.f32 %v4593_v2, %v4593_v2 }
 0xc0d   :  { %v3056_v10 = vmul.f32 %v4596_v6, %v4596_v6 }
 0xc0e   :  { %v3061_v56 = vsel %vm60_vm0, %v3057_v22, 0.0  ;;  %v3230_v22 = vld [vmem:[%s4796_s10 + $0xd8] sm:$0xff] }
 0xc0f   :  { %3062 = vadd.xlane.f32.xlu1 %v3061_v56  ;;  %v3058_v59 = vsel %vm60_vm0, %v3056_v10, 0.0  ;;  %v3755_v10 = vpack.c.bf16 %v3212_v17, %v3211_v15  ;;  %v3757_v56 = vpack.c.bf16 %v3230_v22, %v3229_v19 }
 0xc10   :  { %3059 = vadd.xlane.f32.xlu0 %v3058_v59  ;;  %v3213_v59 = vld [vmem:[%s4796_s10 + $0x50] sm:$0xff] }
 0xc11   :  { %3756 = vmatpush3.bf16.msra.mxu1 %v3755_v10  ;;  %v3759_v29 = vpack.c.bf16 %v3214_v24, %v3213_v59 }
 0xc12   :  { %3758 = vmatprep.subr.bf16.mxu1 %v3757_v56 }
 0xc15   :  { %3760 = vmatpush3.bf16.msra.mxu1 %v3759_v29 }
 0xc16   :  { %3762 = vmatprep.subr.bf16.mxu1 %v3761_v30 }
 0xc9c   :  { %v3063_v31 = vpop.xlane.xlu1 %3062 }
 0xc9d   :  { %v3065_v33 = vmul.f32 0.015625, %v3063_v31  ;;  %v3060_v34 = vpop.xlane.xlu0 %3059 }
 0xc9e   :  { %v3064_v35 = vmul.f32 0.015625, %v3060_v34 }
 0xc9f   :  { %v3067_v16 = vadd.f32 1e-05, %v3065_v33 }
 0xca0   :  { %v3066_v61 = vadd.f32 1e-05, %v3064_v35 }
 0xca1   :  { %3857 = vrsqrt.f32 %v3067_v16 }
 0xca2   :  { %3859 = vrsqrt.f32 %v3066_v61 }
 0xcab   :  { %v3858_v21 = vpop.eup %3857 }
 0xcac   :  { %v3860_v62 = vpop.eup %3859  ;;  %v3071_v25 = vmul.f32 %v3858_v21, %v4593_v2  ;;  %v3216_v2 = vld [vmem:[%s4796_s10 + $0x68] sm:$0xff] }
 0xcad   :  { %v3070_v0 = vmul.f32 %v3860_v62, %v4596_v6  ;;  %v3215_v6 = vld [vmem:[%s4796_s10 + $0x60] sm:$0xff] }
 0xcae   :  { %v3079_v39 = vmul.f32 %v3393_v14, %v3071_v25  ;;  %v3763_v41 = vpack.c.bf16 %v3216_v2, %v3215_v6 }
 0xcaf   :  { %v3078_v1 = vmul.f32 %v3393_v14, %v3070_v0 }
 0xcb0   :  { %v3087_v26 = vadd.f32 %v3394_v37, %v3079_v39  ;;  %3764 = vmatpush3.bf16.msra.mxu1 %v3763_v41 }
 0xcb1   :  { %v3086_v38 = vadd.f32 %v3394_v37, %v3078_v1 }
 0xcb3   :  { %3395 = vmatmul.mubr.msk.f32.vlgmr.msra.gmra.mrb[34].mxu0 %vm60_vm0, %v3086_v38 }
 0xcb4   :  { %3192 = vmatprep.mubr.f32.mxu0 %v3914_v20  ;;  %v3234_v20 = vld [vmem:[%s4796_s10 + $0xf8] sm:$0xff] }
 0xcb5   :  { %v3765_v44 = vpack.c.bf16 %v3234_v20, %v3233_v43 }
 0xcb7   :  { %3396 = vmatmul.mubr.msk.f32.gmra.mrb[36].mxu0 %vm60_vm0, %v3087_v26  ;;  %3766 = vmatprep.subr.bf16.mxu1 %v3765_v44 }
 0xcb8   :  { %3768 = vmatpush3.bf16.msra.mxu1 %v3767_v50 }
 0xd86   :  { %v3188_v53 = vpop.f32.mrb[34].mxu0 }
 0xd87   :  { %v3189_v32 = vadd.f32 %v3188_v53, %v3109_v28  ;;  %v3190_v36 = vpop.f32.mrb[35].mxu0 }
 0xd88   :  { %v3191_v54 = vadd.f32 %v3190_v36, %v3113_v52 }
 0xd89   :  { %v3199_v45 = vmax.f32 %v3189_v32, 0.0 }
 0xd8a   :  { %v3200_v40 = vmax.f32 %v3191_v54, 0.0  ;;  %v3194_v55 = vpop.f32.mrb[36].mxu0 }
 0xd8b   :  { %v3195_v57 = vadd.f32 %v3194_v55, %v3109_v28  ;;  %v3196_v42 = vpop.f32.mrb[37].mxu0 }
 0xd8c   :  { %v3197_v60 = vadd.f32 %v3196_v42, %v3113_v52  ;;  %3306 = vmatprep.mubr.f32.mxu1 %v3200_v40 }
 0xd8d   :  { %3307 = vmatmul.mubr.f32.vlgmr.msra.gmra.mrb[36].mxu1 %v3199_v45  ;;  %v3201_v3 = vmax.f32 %v3195_v57, 0.0 }
 0xd8e   :  { %v3202_v48 = vmax.f32 %v3197_v60, 0.0 }
 0xd90   :  { %3311 = vmatprep.mubr.f32.mxu1 %v3202_v48 }
 0xd91   :  { %3312 = vmatmul.mubr.f32.gmra.mrb[38].mxu1 %v3201_v3 }
 0xe60   :  { %v3504_v4 = vpop.f32.mrb[36].mxu1 }
 0xe61   :  { %v3505_v5 = vpop.f32.mrb[37].mxu1 }
 0xe62   :  { %v3506_v7 = vadd.f32 %v3505_v5, %v3504_v4 }
 0xe64   :  { %v3309_v8 = vadd.f32 %v3506_v7, %v3397_v46  ;;  %v3507_v13 = vpop.f32.mrb[38].mxu1 }
 0xe65   :  { %v3508_v9 = vpop.f32.mrb[39].mxu1 }
 0xe66   :  { %v3317_v58 = vadd.f32 %v3309_v8, %v4586_v12  ;;  %v3509_v15 = vadd.f32 %v3508_v9, %v3507_v13 }
 0xe68   :  { %3319 = vst.msk [vmem:[#allocation6] sm:$0xff] %vm60_vm0, %v3317_v58  ;;  %v3314_v17 = vadd.f32 %v3509_v15, %v3397_v46 }
 0xe6a   :  { %v3318_v19 = vadd.f32 %v3314_v17, %v4584_v11 }
 0xe6c   :  { %3320 = vst.msk [vmem:[#allocation6 + $0x8] sm:$0xff] %vm60_vm0, %v3318_v19 }
 0xe6d   :  { %3896 = shalt.err (!%p3893_p12)
}
 0xe6e   :  { %s3897_s20 = scalar_lea.hbm %s4798_s12, 256 }
 0xe6f   :  { %p3898_p13 = scmp.ne.s32.totalorder %s4798_s12, %s3897_s20  ;;  %p3901_p0 = scmp.lt.u32.totalorder %s3897_s20, %s4798_s12 }
 0xe71   :  { %p3903_p1 = pnand %p3901_p0, %p3898_p13 }
 0xe73   :  { %3906 = shalt.err (!%p3903_p1)
}
 0xe74   :  { %3332 = dma.vmem_to_hbm [thread:$0]  %s3327_s4, 256, %s4798_s12, [#allocation5], %s3912_s13, %s3912_s13, %s3913_s14  }
 0xe75   :  { %3909 = dma.done.wait [#allocation5], 256  }
 0xe76   :  { %3910 = vsyncadd [#allocation5], 4294967040 }
 0xe77   :  { %3336 = vsyncpa [#allocation4], 1 }
 0xe78   :  { %3337 = vsyncpa [#allocation5], 1 }

</bundles_post_ra>
